<compile_context>
chip_gen: v5e
topology: v5e:2x2
jax: 0.10.0
libtpu: 0.0.40
codegen_flags: <defaults>
</compile_context>

<pallas_src>
import jax
import jax.numpy as jnp
from jax.experimental import pallas as pl
from jax.experimental.pallas import tpu as pltpu

LANES = 128  # pad every matmul output (and FC hidden) width to one full lane tile


def _round_up(n, m):
    return -(-n // m) * m


def _pad2(m, rows, cols, dtype):
    out = jnp.zeros((rows, cols), dtype)
    return out.at[: m.shape[0], : m.shape[1]].set(m.astype(dtype))


# ----------------------------------------------------------------------------
# Kernel 1/2: fused conv (one merged matmul) + bias + ReLU + 2x2 maxpool
# ----------------------------------------------------------------------------
def _conv_relu_pool_kernel(p_ref, w_ref, b_ref, o_ref):
    """p_ref: (IMGS, 4, Np, K) bf16 im2col patches grouped by 2x2 pool corner.
    w_ref: (K, 128) bf16; b_ref: (1, 128) f32; o_ref: (IMGS, Np, 128) bf16.
    pool(relu(conv + b)) == relu(max_corner(conv) + b) since ReLU/+bias are
    monotone.  One (IMGS*4*Np, K)@(K,128) dot replaces the 4 per-corner dots;
    Np is a sublane multiple so the reshapes are free views."""
    imgs, _, np_, k = p_ref.shape
    cp = w_ref.shape[1]
    p = p_ref[...].reshape(imgs * 4 * np_, k)
    z = jnp.dot(p, w_ref[...], preferred_element_type=jnp.float32)
    z = z.reshape(imgs, 4, np_, cp)
    z = jnp.maximum(jnp.maximum(z[:, 0], z[:, 1]), jnp.maximum(z[:, 2], z[:, 3]))
    o_ref[...] = jnp.maximum(z + b_ref[...], 0.0).astype(o_ref.dtype)


def _im2col_pool_grouped(x_nhwc, kh, kw, sublane=16):
    """(B,H,W,Ci) -> (B, 4, Np_pad, kh*kw*Ci) bf16; axis 1 = 2x2 pool corner.
    Np_pad rounds Hp*Wp up to a multiple of 16 (bf16 sublane packing) so the
    in-kernel flatten/split of (IMGS, 4, Np_pad) is layout-preserving."""
    B, H, W, Ci = x_nhwc.shape
    Ho, Wo = H - kh + 1, W - kw + 1
    Hp, Wp = Ho // 2, Wo // 2
    K = kh * kw * Ci
    cols = [x_nhwc[:, i:i + Ho, j:j + Wo, :] for i in range(kh) for j in range(kw)]
    p = jnp.stack(cols, axis=3).reshape(B, Ho, Wo, K)      # col idx: (i*kw+j)*Ci+ci
    p = p[:, : 2 * Hp, : 2 * Wp, :]                        # pool floor
    p = p.reshape(B, Hp, 2, Wp, 2, K)
    p = jnp.transpose(p, (0, 2, 4, 1, 3, 5))               # (B, dy, dx, Hp, Wp, K)
    p = p.reshape(B, 4, Hp * Wp, K).astype(jnp.bfloat16)
    Np = Hp * Wp
    Np_pad = _round_up(Np, sublane)
    if Np_pad != Np:
        p = jnp.pad(p, ((0, 0), (0, 0), (0, Np_pad - Np), (0, 0)))
    return p, Np


def conv_relu_pool(x_nhwc, wmat, bias, kh=5, kw=5, imgs_per_block=8):
    """VALID conv (stride 1) + bias + ReLU + 2x2 maxpool -> (B, Hp*Wp, 128) bf16.
    Processes `imgs_per_block` images per grid step (amortizes per-step overhead,
    fattens the MXU M dim) while keeping per-step VMEM well under the 32 MiB
    default scoped limit on all TPU generations."""
    B = x_nhwc.shape[0]
    imgs = min(imgs_per_block, B)
    B_pad = _round_up(B, imgs)
    if B_pad != B:
        x_nhwc = jnp.pad(x_nhwc, ((0, B_pad - B), (0, 0), (0, 0), (0, 0)))
    patches, Np = _im2col_pool_grouped(x_nhwc, kh, kw)
    _, _, Np_pad, K = patches.shape
    Cp = wmat.shape[1]  # 128 lane-padded output channels
    out = pl.pallas_call(
        _conv_relu_pool_kernel,
        out_shape=jax.ShapeDtypeStruct((B_pad, Np_pad, Cp), jnp.bfloat16),
        grid=(B_pad // imgs,),
        in_specs=[
            pl.BlockSpec((imgs, 4, Np_pad, K), lambda b: (b, 0, 0, 0)),
            pl.BlockSpec((K, Cp), lambda b: (0, 0)),
            pl.BlockSpec((1, Cp), lambda b: (0, 0)),
        ],
        out_specs=pl.BlockSpec((imgs, Np_pad, Cp), lambda b: (b, 0, 0)),
        compiler_params=pltpu.CompilerParams(dimension_semantics=("parallel",)),
    )(patches, wmat, bias)
    return out[:B, :Np]   # drop image + spatial padding


# ----------------------------------------------------------------------------
# Kernel 3: fused fc1 -> ReLU -> fc2 -> ReLU -> fc3 (hidden states stay in VMEM)
# ----------------------------------------------------------------------------
def _fc_stack_kernel(x_ref, w1_ref, b1_ref, w2_ref, b2_ref, w3_ref, b3_ref, o_ref):
    h = jnp.dot(x_ref[...], w1_ref[...], preferred_element_type=jnp.float32)
    h = jnp.maximum(h + b1_ref[...], 0.0).astype(jnp.bfloat16)
    h = jnp.dot(h, w2_ref[...], preferred_element_type=jnp.float32)
    h = jnp.maximum(h + b2_ref[...], 0.0).astype(jnp.bfloat16)
    h = jnp.dot(h, w3_ref[...], preferred_element_type=jnp.float32)
    o_ref[...] = (h + b3_ref[...]).astype(o_ref.dtype)


def fc_stack(xf, w1, b1, w2, b2, w3, b3, max_tile=512):
    """xf: (B, 400) -> (B, 128) padded logits.  Rows padded to >=8 (sublane tile);
    row tiles up to 512 (weights + activations per step << VMEM) so fewer grid
    steps amortize the per-step overhead."""
    B, K = xf.shape
    Bp = max(8, _round_up(B, 8))
    TM = min(Bp, max_tile)
    Bp = _round_up(Bp, TM)
    xpad = jnp.zeros((Bp, K), jnp.bfloat16).at[:B].set(xf.astype(jnp.bfloat16))
    N = w3.shape[1]
    out = pl.pallas_call(
        _fc_stack_kernel,
        out_shape=jax.ShapeDtypeStruct((Bp, N), jnp.float32),
        grid=(Bp // TM,),
        in_specs=[
            pl.BlockSpec((TM, K), lambda m: (m, 0)),
            pl.BlockSpec((K, w1.shape[1]), lambda m: (0, 0)),
            pl.BlockSpec((1, b1.shape[1]), lambda m: (0, 0)),
            pl.BlockSpec((w2.shape[0], w2.shape[1]), lambda m: (0, 0)),
            pl.BlockSpec((1, b2.shape[1]), lambda m: (0, 0)),
            pl.BlockSpec((w3.shape[0], w3.shape[1]), lambda m: (0, 0)),
            pl.BlockSpec((1, b3.shape[1]), lambda m: (0, 0)),
        ],
        out_specs=pl.BlockSpec((TM, N), lambda m: (m, 0)),
        compiler_params=pltpu.CompilerParams(dimension_semantics=("parallel",)),
    )(xpad, w1, b1, w2, b2, w3, b3)
    return out[:B]


# ----------------------------------------------------------------------------
# Parameter prep (ONE-TIME, hoisted out of the jitted forward):
# OIHW -> im2col matrices, lane padding to 128, bf16 MXU operands, and fc1
# column permutation so the kernel can flatten NHWC directly.
# Correctness invariant: _pad2 zero-fills all padded weight rows/cols AND bias
# lanes, so padded channels / hidden columns stay exactly zero through the net.
# ----------------------------------------------------------------------------
def prepare_params(p):
    w1 = jnp.transpose(p["w1"], (2, 3, 1, 0)).reshape(75, 6)       # (kh*kw*Ci, Co)
    w2 = jnp.transpose(p["w2"], (2, 3, 1, 0)).reshape(150, 16)
    # fc1 columns: torch flatten index c*25+s  ->  our NHWC flatten index s*16+c
    f1 = jnp.transpose(p["fc1w"].reshape(120, 16, 25), (2, 1, 0)).reshape(400, 120)
    return {
        "w1": _pad2(w1, 75, LANES, jnp.bfloat16),
        "b1": _pad2(p["b1"].reshape(1, 6), 1, LANES, jnp.float32),
        "w2": _pad2(w2, 150, LANES, jnp.bfloat16),
        "b2": _pad2(p["b2"].reshape(1, 16), 1, LANES, jnp.float32),
        "f1": _pad2(f1, 400, LANES, jnp.bfloat16),
        "fb1": _pad2(p["fc1b"].reshape(1, 120), 1, LANES, jnp.float32),
        "f2": _pad2(p["fc2w"].T, LANES, LANES, jnp.bfloat16),
        "fb2": _pad2(p["fc2b"].reshape(1, 84), 1, LANES, jnp.float32),
        "f3": _pad2(p["fc3w"].T, LANES, LANES, jnp.bfloat16),
        "fb3": _pad2(p["fc3b"].reshape(1, 10), 1, LANES, jnp.float32),
    }


# ----------------------------------------------------------------------------
# Full forward pass (matches Net.forward); takes pre-prepared params.
# ----------------------------------------------------------------------------
def net_forward(x_nchw, pp):
    B = x_nchw.shape[0]
    x = jnp.transpose(x_nchw, (0, 2, 3, 1))                        # NCHW -> NHWC
    a1 = conv_relu_pool(x, pp["w1"], pp["b1"], imgs_per_block=8)   # (B, 196, 128) bf16
    a1 = a1[..., :6].reshape(B, 14, 14, 6)                         # drop channel padding
    a2 = conv_relu_pool(a1, pp["w2"], pp["b2"], imgs_per_block=32) # (B, 25, 128) bf16
    xf = a2[..., :16].reshape(B, 400)                              # NHWC flatten (fc1 pre-permuted)
    out = fc_stack(xf, pp["f1"], pp["fb1"], pp["f2"], pp["fb2"], pp["f3"], pp["fb3"])
    return out[:, :10]


# ----------------------------------------------------------------------------
# Deterministic synthetic parameters (same shapes as Net.__init__)
# ----------------------------------------------------------------------------
def init_params(key):
    ks = jax.random.split(key, 10)

    def n(k, shape, scale):
        return (scale * jax.random.normal(k, shape)).astype(jnp.float32)

    return {
        "w1": n(ks[0], (6, 3, 5, 5), 0.10),
        "b1": n(ks[1], (6,), 0.10),
        "w2": n(ks[2], (16, 6, 5, 5), 0.10),
        "b2": n(ks[3], (16,), 0.10),
        "fc1w": n(ks[4], (120, 16 * 5 * 5), 0.05),
        "fc1b": n(ks[5], (120,), 0.05),
        "fc2w": n(ks[6], (84, 120), 0.05),
        "fc2b": n(ks[7], (84,), 0.05),
        "fc3w": n(ks[8], (10, 84), 0.05),
        "fc3b": n(ks[9], (10,), 0.05),
    }


# ----------------------------------------------------------------------------
# Pure-JAX reference (mirrors the PyTorch forward exactly) for validation
# ----------------------------------------------------------------------------
def reference_forward(x_nchw, p):
    def conv(x, w, b):
        y = jax.lax.conv_general_dilated(
            x, w, window_strides=(1, 1), padding="VALID",
            dimension_numbers=("NCHW", "OIHW", "NCHW"),
            precision=jax.lax.Precision.HIGHEST)
        return y + b[None, :, None, None]

    def pool(x):
        return jax.lax.reduce_window(
            x, -jnp.inf, jax.lax.max, (1, 1, 2, 2), (1, 1, 2, 2), "VALID")

    x = pool(jax.nn.relu(conv(x_nchw, p["w1"], p["b1"])))
    x = pool(jax.nn.relu(conv(x, p["w2"], p["b2"])))
    x = x.reshape(x.shape[0], -1)
    hp = jax.lax.Precision.HIGHEST
    x = jax.nn.relu(jnp.dot(x, p["fc1w"].T, precision=hp) + p["fc1b"])
    x = jax.nn.relu(jnp.dot(x, p["fc2w"].T, precision=hp) + p["fc2b"])
    x = jnp.dot(x, p["fc3w"].T, precision=hp) + p["fc3b"]
    return x


if __name__ == "__main__":
    # conv/fc arithmetic (16*5*5 fc1 input) forces 32x32 spatial input
    x = jax.random.normal(jax.random.PRNGKey(0), (2, 3, 32, 32), dtype=jnp.float32)
    params = init_params(jax.random.PRNGKey(42))
    prepared = prepare_params(params)          # one-time prep, outside the jitted forward

    fwd = jax.jit(net_forward)
    out = jax.block_until_ready(fwd(x, prepared))
    ref = jax.block_until_ready(reference_forward(x, params))

    assert out.shape == (2, 10), out.shape
    assert jnp.allclose(out, ref, atol=2e-2, rtol=2e-2), (
        "Pallas output mismatch vs JAX reference; max abs diff = "
        f"{float(jnp.max(jnp.abs(out - ref)))}")

    print("KERNEL_OK")
</pallas_src>

<mosaic_0001>
module attributes {stable_mosaic.version = 11 : i64} {
  func.func @_conv_relu_pool_kernel(%arg0: i32, %arg1: memref<2x4x208x75xbf16, #tpu.memory_space<vmem>>, %arg2: memref<75x128xbf16, #tpu.memory_space<vmem>>, %arg3: memref<1x128xf32, #tpu.memory_space<vmem>>, %arg4: memref<2x208x128xbf16, #tpu.memory_space<vmem>>) attributes {dimension_semantics = [#tpu.dimension_semantics<parallel>], iteration_bounds = array<i64: 1>, scalar_prefetch = 0 : i64, scratch_operands = 0 : i64, tpu.core_type = #tpu.core_type<tc>, window_params = [{transform_indices = @transform_0, window_bounds = array<i64: 2, 4, 208, 75>}, {pipeline_mode = #tpu.pipeline_mode<synchronous>, transform_indices = @transform_1, window_bounds = array<i64: 75, 128>}, {pipeline_mode = #tpu.pipeline_mode<synchronous>, transform_indices = @transform_2, window_bounds = array<i64: 1, 128>}, {transform_indices = @transform_3, window_bounds = array<i64: 2, 208, 128>}]} {
    %c0 = arith.constant 0 : index
    %c0_0 = arith.constant 0 : index
    %c0_1 = arith.constant 0 : index
    %c0_2 = arith.constant 0 : index
    %0 = vector.load %arg1[%c0, %c0_0, %c0_1, %c0_2] : memref<2x4x208x75xbf16, #tpu.memory_space<vmem>>, vector<2x4x208x75xbf16>
    %1 = vector.shape_cast %0 : vector<2x4x208x75xbf16> to vector<1664x75xbf16>
    %c0_3 = arith.constant 0 : index
    %c0_4 = arith.constant 0 : index
    %2 = vector.load %arg2[%c0_3, %c0_4] : memref<75x128xbf16, #tpu.memory_space<vmem>>, vector<75x128xbf16>
    %cst = arith.constant dense<0.000000e+00> : vector<1664x128xf32>
    %3 = tpu.matmul %1, %2, %cst {dimension_numbers = #tpu.dot_dimension_numbers<[1], [0], [0], [1], [0, 0, 1, 1], [], []>} : vector<1664x75xbf16>, vector<75x128xbf16>, vector<1664x128xf32> -> vector<1664x128xf32>
    %4 = vector.shape_cast %3 : vector<1664x128xf32> to vector<2x4x208x128xf32>
    %5 = vector.extract_strided_slice %4 {offsets = [0, 0, 0, 0], sizes = [2, 1, 208, 128], strides = [1, 1, 1, 1]} : vector<2x4x208x128xf32> to vector<2x1x208x128xf32>
    %6 = vector.shape_cast %5 : vector<2x1x208x128xf32> to vector<2x208x128xf32>
    %7 = vector.extract_strided_slice %4 {offsets = [0, 1, 0, 0], sizes = [2, 1, 208, 128], strides = [1, 1, 1, 1]} : vector<2x4x208x128xf32> to vector<2x1x208x128xf32>
    %8 = vector.shape_cast %7 : vector<2x1x208x128xf32> to vector<2x208x128xf32>
    %9 = arith.maximumf %6, %8 : vector<2x208x128xf32>
    %10 = vector.extract_strided_slice %4 {offsets = [0, 2, 0, 0], sizes = [2, 1, 208, 128], strides = [1, 1, 1, 1]} : vector<2x4x208x128xf32> to vector<2x1x208x128xf32>
    %11 = vector.shape_cast %10 : vector<2x1x208x128xf32> to vector<2x208x128xf32>
    %12 = vector.extract_strided_slice %4 {offsets = [0, 3, 0, 0], sizes = [2, 1, 208, 128], strides = [1, 1, 1, 1]} : vector<2x4x208x128xf32> to vector<2x1x208x128xf32>
    %13 = vector.shape_cast %12 : vector<2x1x208x128xf32> to vector<2x208x128xf32>
    %14 = arith.maximumf %11, %13 : vector<2x208x128xf32>
    %15 = arith.maximumf %9, %14 : vector<2x208x128xf32>
    %c0_5 = arith.constant 0 : index
    %c0_6 = arith.constant 0 : index
    %16 = vector.load %arg3[%c0_5, %c0_6] : memref<1x128xf32, #tpu.memory_space<vmem>>, vector<1x128xf32>
    %17 = vector.shape_cast %16 : vector<1x128xf32> to vector<1x1x128xf32>
    %18 = vector.broadcast %17 : vector<1x1x128xf32> to vector<2x208x128xf32>
    %19 = arith.addf %15, %18 : vector<2x208x128xf32>
    %cst_7 = arith.constant 0.000000e+00 : f32
    %20 = vector.broadcast %cst_7 : f32 to vector<2x208x128xf32>
    %21 = arith.maximumf %19, %20 : vector<2x208x128xf32>
    %22 = arith.truncf %21 : vector<2x208x128xf32> to vector<2x208x128xbf16>
    %c0_8 = arith.constant 0 : index
    %c0_9 = arith.constant 0 : index
    %c0_10 = arith.constant 0 : index
    %23 = vector.load %arg4[%c0_8, %c0_9, %c0_10] : memref<2x208x128xbf16, #tpu.memory_space<vmem>>, vector<2x208x128xbf16>
    tpu.vector_store %arg4[%c0_8, %c0_9, %c0_10], %22 {strides = array<i32>} : memref<2x208x128xbf16, #tpu.memory_space<vmem>>, vector<2x208x128xbf16>,
    return
  }
  func.func @transform_0(%arg0: i32) -> (i32, i32, i32, i32) {
    %c0_i32 = arith.constant 0 : i32
    %c0_i32_0 = arith.constant 0 : i32
    %c0_i32_1 = arith.constant 0 : i32
    %c0_i32_2 = arith.constant 0 : i32
    return %arg0, %c0_i32, %c0_i32_0, %c0_i32_1 : i32, i32, i32, i32
  }
  func.func @transform_1(%arg0: i32) -> (i32, i32) {
    %c0_i32 = arith.constant 0 : i32
    %c0_i32_0 = arith.constant 0 : i32
    %c0_i32_1 = arith.constant 0 : i32
    return %c0_i32, %c0_i32_0 : i32, i32
  }
  func.func @transform_2(%arg0: i32) -> (i32, i32) {
    %c0_i32 = arith.constant 0 : i32
    %c0_i32_0 = arith.constant 0 : i32
    %c0_i32_1 = arith.constant 0 : i32
    return %c0_i32, %c0_i32_0 : i32, i32
  }
  func.func @transform_3(%arg0: i32) -> (i32, i32, i32) {
    %c0_i32 = arith.constant 0 : i32
    %c0_i32_0 = arith.constant 0 : i32
    %c0_i32_1 = arith.constant 0 : i32
    return %arg0, %c0_i32, %c0_i32_0 : i32, i32, i32
  }
}

module attributes {stable_mosaic.version = 11 : i64} {
  func.func @_conv_relu_pool_kernel(%arg0: i32, %arg1: memref<2x4x32x150xbf16, #tpu.memory_space<vmem>>, %arg2: memref<150x128xbf16, #tpu.memory_space<vmem>>, %arg3: memref<1x128xf32, #tpu.memory_space<vmem>>, %arg4: memref<2x32x128xbf16, #tpu.memory_space<vmem>>) attributes {dimension_semantics = [#tpu.dimension_semantics<parallel>], iteration_bounds = array<i64: 1>, scalar_prefetch = 0 : i64, scratch_operands = 0 : i64, tpu.core_type = #tpu.core_type<tc>, window_params = [{transform_indices = @transform_0, window_bounds = array<i64: 2, 4, 32, 150>}, {pipeline_mode = #tpu.pipeline_mode<synchronous>, transform_indices = @transform_1, window_bounds = array<i64: 150, 128>}, {pipeline_mode = #tpu.pipeline_mode<synchronous>, transform_indices = @transform_2, window_bounds = array<i64: 1, 128>}, {transform_indices = @transform_3, window_bounds = array<i64: 2, 32, 128>}]} {
    %c0 = arith.constant 0 : index
    %c0_0 = arith.constant 0 : index
    %c0_1 = arith.constant 0 : index
    %c0_2 = arith.constant 0 : index
    %0 = vector.load %arg1[%c0, %c0_0, %c0_1, %c0_2] : memref<2x4x32x150xbf16, #tpu.memory_space<vmem>>, vector<2x4x32x150xbf16>
    %1 = vector.shape_cast %0 : vector<2x4x32x150xbf16> to vector<256x150xbf16>
    %c0_3 = arith.constant 0 : index
    %c0_4 = arith.constant 0 : index
    %2 = vector.load %arg2[%c0_3, %c0_4] : memref<150x128xbf16, #tpu.memory_space<vmem>>, vector<150x128xbf16>
    %cst = arith.constant dense<0.000000e+00> : vector<256x128xf32>
    %3 = tpu.matmul %1, %2, %cst {dimension_numbers = #tpu.dot_dimension_numbers<[1], [0], [0], [1], [0, 0, 1, 1], [], []>} : vector<256x150xbf16>, vector<150x128xbf16>, vector<256x128xf32> -> vector<256x128xf32>
    %4 = vector.shape_cast %3 : vector<256x128xf32> to vector<2x4x32x128xf32>
    %5 = vector.extract_strided_slice %4 {offsets = [0, 0, 0, 0], sizes = [2, 1, 32, 128], strides = [1, 1, 1, 1]} : vector<2x4x32x128xf32> to vector<2x1x32x128xf32>
    %6 = vector.shape_cast %5 : vector<2x1x32x128xf32> to vector<2x32x128xf32>
    %7 = vector.extract_strided_slice %4 {offsets = [0, 1, 0, 0], sizes = [2, 1, 32, 128], strides = [1, 1, 1, 1]} : vector<2x4x32x128xf32> to vector<2x1x32x128xf32>
    %8 = vector.shape_cast %7 : vector<2x1x32x128xf32> to vector<2x32x128xf32>
    %9 = arith.maximumf %6, %8 : vector<2x32x128xf32>
    %10 = vector.extract_strided_slice %4 {offsets = [0, 2, 0, 0], sizes = [2, 1, 32, 128], strides = [1, 1, 1, 1]} : vector<2x4x32x128xf32> to vector<2x1x32x128xf32>
    %11 = vector.shape_cast %10 : vector<2x1x32x128xf32> to vector<2x32x128xf32>
    %12 = vector.extract_strided_slice %4 {offsets = [0, 3, 0, 0], sizes = [2, 1, 32, 128], strides = [1, 1, 1, 1]} : vector<2x4x32x128xf32> to vector<2x1x32x128xf32>
    %13 = vector.shape_cast %12 : vector<2x1x32x128xf32> to vector<2x32x128xf32>
    %14 = arith.maximumf %11, %13 : vector<2x32x128xf32>
    %15 = arith.maximumf %9, %14 : vector<2x32x128xf32>
    %c0_5 = arith.constant 0 : index
    %c0_6 = arith.constant 0 : index
    %16 = vector.load %arg3[%c0_5, %c0_6] : memref<1x128xf32, #tpu.memory_space<vmem>>, vector<1x128xf32>
    %17 = vector.shape_cast %16 : vector<1x128xf32> to vector<1x1x128xf32>
    %18 = vector.broadcast %17 : vector<1x1x128xf32> to vector<2x32x128xf32>
    %19 = arith.addf %15, %18 : vector<2x32x128xf32>
    %cst_7 = arith.constant 0.000000e+00 : f32
    %20 = vector.broadcast %cst_7 : f32 to vector<2x32x128xf32>
    %21 = arith.maximumf %19, %20 : vector<2x32x128xf32>
    %22 = arith.truncf %21 : vector<2x32x128xf32> to vector<2x32x128xbf16>
    %c0_8 = arith.constant 0 : index
    %c0_9 = arith.constant 0 : index
    %c0_10 = arith.constant 0 : index
    %23 = vector.load %arg4[%c0_8, %c0_9, %c0_10] : memref<2x32x128xbf16, #tpu.memory_space<vmem>>, vector<2x32x128xbf16>
    tpu.vector_store %arg4[%c0_8, %c0_9, %c0_10], %22 {strides = array<i32>} : memref<2x32x128xbf16, #tpu.memory_space<vmem>>, vector<2x32x128xbf16>,
    return
  }
  func.func @transform_0(%arg0: i32) -> (i32, i32, i32, i32) {
    %c0_i32 = arith.constant 0 : i32
    %c0_i32_0 = arith.constant 0 : i32
    %c0_i32_1 = arith.constant 0 : i32
    %c0_i32_2 = arith.constant 0 : i32
    return %arg0, %c0_i32, %c0_i32_0, %c0_i32_1 : i32, i32, i32, i32
  }
  func.func @transform_1(%arg0: i32) -> (i32, i32) {
    %c0_i32 = arith.constant 0 : i32
    %c0_i32_0 = arith.constant 0 : i32
    %c0_i32_1 = arith.constant 0 : i32
    return %c0_i32, %c0_i32_0 : i32, i32
  }
  func.func @transform_2(%arg0: i32) -> (i32, i32) {
    %c0_i32 = arith.constant 0 : i32
    %c0_i32_0 = arith.constant 0 : i32
    %c0_i32_1 = arith.constant 0 : i32
    return %c0_i32, %c0_i32_0 : i32, i32
  }
  func.func @transform_3(%arg0: i32) -> (i32, i32, i32) {
    %c0_i32 = arith.constant 0 : i32
    %c0_i32_0 = arith.constant 0 : i32
    %c0_i32_1 = arith.constant 0 : i32
    return %arg0, %c0_i32, %c0_i32_0 : i32, i32, i32
  }
}

module attributes {stable_mosaic.version = 11 : i64} {
  func.func @_fc_stack_kernel(%arg0: i32, %arg1: memref<8x400xbf16, #tpu.memory_space<vmem>>, %arg2: memref<400x128xbf16, #tpu.memory_space<vmem>>, %arg3: memref<1x128xf32, #tpu.memory_space<vmem>>, %arg4: memref<128x128xbf16, #tpu.memory_space<vmem>>, %arg5: memref<1x128xf32, #tpu.memory_space<vmem>>, %arg6: memref<128x128xbf16, #tpu.memory_space<vmem>>, %arg7: memref<1x128xf32, #tpu.memory_space<vmem>>, %arg8: memref<8x128xf32, #tpu.memory_space<vmem>>) attributes {dimension_semantics = [#tpu.dimension_semantics<parallel>], iteration_bounds = array<i64: 1>, scalar_prefetch = 0 : i64, scratch_operands = 0 : i64, tpu.core_type = #tpu.core_type<tc>, window_params = [{transform_indices = @transform_0, window_bounds = array<i64: 8, 400>}, {pipeline_mode = #tpu.pipeline_mode<synchronous>, transform_indices = @transform_1, window_bounds = array<i64: 400, 128>}, {pipeline_mode = #tpu.pipeline_mode<synchronous>, transform_indices = @transform_2, window_bounds = array<i64: 1, 128>}, {pipeline_mode = #tpu.pipeline_mode<synchronous>, transform_indices = @transform_3, window_bounds = array<i64: 128, 128>}, {pipeline_mode = #tpu.pipeline_mode<synchronous>, transform_indices = @transform_4, window_bounds = array<i64: 1, 128>}, {pipeline_mode = #tpu.pipeline_mode<synchronous>, transform_indices = @transform_5, window_bounds = array<i64: 128, 128>}, {pipeline_mode = #tpu.pipeline_mode<synchronous>, transform_indices = @transform_6, window_bounds = array<i64: 1, 128>}, {transform_indices = @transform_7, window_bounds = array<i64: 8, 128>}]} {
    %c0 = arith.constant 0 : index
    %c0_0 = arith.constant 0 : index
    %0 = vector.load %arg1[%c0, %c0_0] : memref<8x400xbf16, #tpu.memory_space<vmem>>, vector<8x400xbf16>
    %c0_1 = arith.constant 0 : index
    %c0_2 = arith.constant 0 : index
    %1 = vector.load %arg2[%c0_1, %c0_2] : memref<400x128xbf16, #tpu.memory_space<vmem>>, vector<400x128xbf16>
    %cst = arith.constant dense<0.000000e+00> : vector<8x128xf32>
    %2 = tpu.matmul %0, %1, %cst {dimension_numbers = #tpu.dot_dimension_numbers<[1], [0], [0], [1], [0, 0, 1, 1], [], []>} : vector<8x400xbf16>, vector<400x128xbf16>, vector<8x128xf32> -> vector<8x128xf32>
    %c0_3 = arith.constant 0 : index
    %c0_4 = arith.constant 0 : index
    %3 = vector.load %arg3[%c0_3, %c0_4] : memref<1x128xf32, #tpu.memory_space<vmem>>, vector<1x128xf32>
    %4 = vector.broadcast %3 : vector<1x128xf32> to vector<8x128xf32>
    %5 = arith.addf %2, %4 : vector<8x128xf32>
    %cst_5 = arith.constant 0.000000e+00 : f32
    %6 = vector.broadcast %cst_5 : f32 to vector<8x128xf32>
    %7 = arith.maximumf %5, %6 : vector<8x128xf32>
    %8 = arith.truncf %7 : vector<8x128xf32> to vector<8x128xbf16>
    %c0_6 = arith.constant 0 : index
    %c0_7 = arith.constant 0 : index
    %9 = vector.load %arg4[%c0_6, %c0_7] : memref<128x128xbf16, #tpu.memory_space<vmem>>, vector<128x128xbf16>
    %cst_8 = arith.constant dense<0.000000e+00> : vector<8x128xf32>
    %10 = tpu.matmul %8, %9, %cst_8 {dimension_numbers = #tpu.dot_dimension_numbers<[1], [0], [0], [1], [0, 0, 1, 1], [], []>} : vector<8x128xbf16>, vector<128x128xbf16>, vector<8x128xf32> -> vector<8x128xf32>
    %c0_9 = arith.constant 0 : index
    %c0_10 = arith.constant 0 : index
    %11 = vector.load %arg5[%c0_9, %c0_10] : memref<1x128xf32, #tpu.memory_space<vmem>>, vector<1x128xf32>
    %12 = vector.broadcast %11 : vector<1x128xf32> to vector<8x128xf32>
    %13 = arith.addf %10, %12 : vector<8x128xf32>
    %cst_11 = arith.constant 0.000000e+00 : f32
    %14 = vector.broadcast %cst_11 : f32 to vector<8x128xf32>
    %15 = arith.maximumf %13, %14 : vector<8x128xf32>
    %16 = arith.truncf %15 : vector<8x128xf32> to vector<8x128xbf16>
    %c0_12 = arith.constant 0 : index
    %c0_13 = arith.constant 0 : index
    %17 = vector.load %arg6[%c0_12, %c0_13] : memref<128x128xbf16, #tpu.memory_space<vmem>>, vector<128x128xbf16>
    %cst_14 = arith.constant dense<0.000000e+00> : vector<8x128xf32>
    %18 = tpu.matmul %16, %17, %cst_14 {dimension_numbers = #tpu.dot_dimension_numbers<[1], [0], [0], [1], [0, 0, 1, 1], [], []>} : vector<8x128xbf16>, vector<128x128xbf16>, vector<8x128xf32> -> vector<8x128xf32>
    %c0_15 = arith.constant 0 : index
    %c0_16 = arith.constant 0 : index
    %19 = vector.load %arg7[%c0_15, %c0_16] : memref<1x128xf32, #tpu.memory_space<vmem>>, vector<1x128xf32>
    %20 = vector.broadcast %19 : vector<1x128xf32> to vector<8x128xf32>
    %21 = arith.addf %18, %20 : vector<8x128xf32>
    %c0_17 = arith.constant 0 : index
    %c0_18 = arith.constant 0 : index
    %22 = vector.load %arg8[%c0_17, %c0_18] : memref<8x128xf32, #tpu.memory_space<vmem>>, vector<8x128xf32>
    tpu.vector_store %arg8[%c0_17, %c0_18], %21 {strides = array<i32>} : memref<8x128xf32, #tpu.memory_space<vmem>>, vector<8x128xf32>,
    return
  }
  func.func @transform_0(%arg0: i32) -> (i32, i32) {
    %c0_i32 = arith.constant 0 : i32
    %c0_i32_0 = arith.constant 0 : i32
    return %arg0, %c0_i32 : i32, i32
  }
  func.func @transform_1(%arg0: i32) -> (i32, i32) {
    %c0_i32 = arith.constant 0 : i32
    %c0_i32_0 = arith.constant 0 : i32
    %c0_i32_1 = arith.constant 0 : i32
    return %c0_i32, %c0_i32_0 : i32, i32
  }
  func.func @transform_2(%arg0: i32) -> (i32, i32) {
    %c0_i32 = arith.constant 0 : i32
    %c0_i32_0 = arith.constant 0 : i32
    %c0_i32_1 = arith.constant 0 : i32
    return %c0_i32, %c0_i32_0 : i32, i32
  }
  func.func @transform_3(%arg0: i32) -> (i32, i32) {
    %c0_i32 = arith.constant 0 : i32
    %c0_i32_0 = arith.constant 0 : i32
    %c0_i32_1 = arith.constant 0 : i32
    return %c0_i32, %c0_i32_0 : i32, i32
  }
  func.func @transform_4(%arg0: i32) -> (i32, i32) {
    %c0_i32 = arith.constant 0 : i32
    %c0_i32_0 = arith.constant 0 : i32
    %c0_i32_1 = arith.constant 0 : i32
    return %c0_i32, %c0_i32_0 : i32, i32
  }
  func.func @transform_5(%arg0: i32) -> (i32, i32) {
    %c0_i32 = arith.constant 0 : i32
    %c0_i32_0 = arith.constant 0 : i32
    %c0_i32_1 = arith.constant 0 : i32
    return %c0_i32, %c0_i32_0 : i32, i32
  }
  func.func @transform_6(%arg0: i32) -> (i32, i32) {
    %c0_i32 = arith.constant 0 : i32
    %c0_i32_0 = arith.constant 0 : i32
    %c0_i32_1 = arith.constant 0 : i32
    return %c0_i32, %c0_i32_0 : i32, i32
  }
  func.func @transform_7(%arg0: i32) -> (i32, i32) {
    %c0_i32 = arith.constant 0 : i32
    %c0_i32_0 = arith.constant 0 : i32
    return %arg0, %c0_i32 : i32, i32
  }
}

</mosaic_0001>

<bundles_post_ra>
// kernel: net_forward.3
= control target key start
LH: loop header
LB: loop body
LE: loop exit
PB: predicated region body
PF: predicated region fallthrough
CT: control target
= control target key end

     0   :  { %vm1095_vm0 = vcmask 1044480   ;;  %vm1096_vm1 = vcmask 1045504   ;;  %v2824_v2 = vmov 65535   ;;  %vm782_vm2 = vcmask 613376   ;;  %s3726_s1 = inlined_call_operand.vmem [shape: bf16[75,128], index: 1, kind: input, shape index: {}]   ;;  %s3727_s0 = inlined_call_operand.vmem [shape: bf16[2,4,208,75], index: 0, kind: input, shape index: {}]   ;;  %s3728_s2 = inlined_call_operand.vmem [shape: f32[1,128], index: 2, kind: input, shape index: {}]   ;;  %s3729_s3 = inlined_call_operand.vmem [shape: bf16[2,208,128], index: 3, kind: output, shape index: {}]  }
   0x1   :  { %v2437_v0 = vld [vmem:[%s3726_s1 + $0x20] sm:$0xf]  ;;  %v2651_v1 = vld [vmem:[%s3726_s1 + $0x20] sm:$0x30]  ;;  %v1097_v3 = vsel %vm1095_vm0, 4294967295, %v2824_v2  ;;  %v2650_v7 = vld [vmem:[%s3726_s1 + $0x18] sm:$0xff] }
   0x2   :  { %v2438_v4 = vor.u32 %v2651_v1, %v2437_v0  ;;  %v1098_v5 = vsel %vm1096_vm1, %v1097_v3, 0  ;;  %v2649_v8 = vld [vmem:[%s3726_s1 + $0x10] sm:$0xff]  ;;  %v2648_v9 = vld [vmem:[%s3726_s1 + $0x8] sm:$0xff]  ;;  %v2647_v10 = vld [vmem:[%s3726_s1] sm:$0xff] }
   0x3   :  { %v2543_v11 = vld [vmem:[%s3727_s0] sm:$0xff]  ;;  %v2569_v12 = vld [vmem:[%s3727_s0 + $0xd0] sm:$0xff]  ;;  %v2544_v15 = vld [vmem:[%s3727_s0 + $0x8] sm:$0xff] }
   0x4   :  { %v1100_v6 = vand.u32 %v2438_v4, %v1098_v5  ;;  %v2595_v13 = vld [vmem:[%s3727_s0 + $0x1a0] sm:$0xff]  ;;  %v2621_v14 = vld [vmem:[%s3727_s0 + $0x270] sm:$0xff]  ;;  %v2570_v16 = vld [vmem:[%s3727_s0 + $0xd8] sm:$0xff] }
   0x5   :  { %v2596_v17 = vld [vmem:[%s3727_s0 + $0x1a8] sm:$0xff]  ;;  %v2622_v18 = vld [vmem:[%s3727_s0 + $0x278] sm:$0xff]  ;;  %v2545_v19 = vld [vmem:[%s3727_s0 + $0x10] sm:$0xff] }
   0x6   :  { %1105 = vmatpush.bf16.msra.mxu0 %v1100_v6  ;;  %2807 = vmatpush.bf16.msra.mxu1 %v1100_v6  ;;  %v2571_v20 = vld [vmem:[%s3727_s0 + $0xe0] sm:$0xff]  ;;  %v2597_v21 = vld [vmem:[%s3727_s0 + $0x1b0] sm:$0xff]  ;;  %v2546_v23 = vld [vmem:[%s3727_s0 + $0x18] sm:$0xff] }
   0x7   :  { %2808 = vmatpush.bf16.msra.mxu2 %v1100_v6  ;;  %2809 = vmatpush.bf16.msra.mxu3 %v1100_v6  ;;  %v2623_v22 = vld [vmem:[%s3727_s0 + $0x280] sm:$0xff]  ;;  %v2572_v24 = vld [vmem:[%s3727_s0 + $0xe8] sm:$0xff]  ;;  %v2598_v25 = vld [vmem:[%s3727_s0 + $0x1b8] sm:$0xff] }
   0x8   :  { %v2624_v26 = vld [vmem:[%s3727_s0 + $0x288] sm:$0xff]  ;;  %v2547_v27 = vld [vmem:[%s3727_s0 + $0x20] sm:$0xff]  ;;  %v2573_v28 = vld [vmem:[%s3727_s0 + $0xf0] sm:$0xff] }
   0x9   :  { %v2599_v29 = vld [vmem:[%s3727_s0 + $0x1c0] sm:$0xff]  ;;  %v2625_v30 = vld [vmem:[%s3727_s0 + $0x290] sm:$0xff]  ;;  %v2548_v31 = vld [vmem:[%s3727_s0 + $0x28] sm:$0xff] }
   0xa   :  { %1106 = vmatpush.bf16.msra.mxu0 %v2650_v7  ;;  %2810 = vmatpush.bf16.msra.mxu1 %v2650_v7  ;;  %v2574_v32 = vld [vmem:[%s3727_s0 + $0xf8] sm:$0xff]  ;;  %v2600_v33 = vld [vmem:[%s3727_s0 + $0x1c8] sm:$0xff]  ;;  %v2549_v35 = vld [vmem:[%s3727_s0 + $0x30] sm:$0xff] }
   0xb   :  { %2811 = vmatpush.bf16.msra.mxu2 %v2650_v7  ;;  %2812 = vmatpush.bf16.msra.mxu3 %v2650_v7  ;;  %v2626_v34 = vld [vmem:[%s3727_s0 + $0x298] sm:$0xff]  ;;  %v2575_v36 = vld [vmem:[%s3727_s0 + $0x100] sm:$0xff]  ;;  %v2601_v37 = vld [vmem:[%s3727_s0 + $0x1d0] sm:$0xff] }
   0xc   :  { %v2627_v38 = vld [vmem:[%s3727_s0 + $0x2a0] sm:$0xff]  ;;  %v2550_v39 = vld [vmem:[%s3727_s0 + $0x38] sm:$0xff]  ;;  %v2576_v40 = vld [vmem:[%s3727_s0 + $0x108] sm:$0xff] }
   0xd   :  { %v2602_v41 = vld [vmem:[%s3727_s0 + $0x1d8] sm:$0xff]  ;;  %v2628_v42 = vld [vmem:[%s3727_s0 + $0x2a8] sm:$0xff]  ;;  %v2551_v43 = vld [vmem:[%s3727_s0 + $0x40] sm:$0xff] }
   0xe   :  { %1107 = vmatpush.bf16.msra.mxu0 %v2649_v8  ;;  %2813 = vmatpush.bf16.msra.mxu1 %v2649_v8  ;;  %v2577_v44 = vld [vmem:[%s3727_s0 + $0x110] sm:$0xff]  ;;  %v2603_v47 = vld [vmem:[%s3727_s0 + $0x1e0] sm:$0xff]  ;;  %v2552_v55 = vld [vmem:[%s3727_s0 + $0x48] sm:$0xff] }
   0xf   :  { %2814 = vmatpush.bf16.msra.mxu2 %v2649_v8  ;;  %2815 = vmatpush.bf16.msra.mxu3 %v2649_v8  ;;  %v2629_v48 = vld [vmem:[%s3727_s0 + $0x2b0] sm:$0xff]  ;;  %v2578_v56 = vld [vmem:[%s3727_s0 + $0x118] sm:$0xff]  ;;  %v2604_v59 = vld [vmem:[%s3727_s0 + $0x1e8] sm:$0xff] }
  0x10   :  { %v2630_v60 = vld [vmem:[%s3727_s0 + $0x2b8] sm:$0xff]  ;;  %v2553_v3 = vld [vmem:[%s3727_s0 + $0x50] sm:$0xff]  ;;  %v2579_v4 = vld [vmem:[%s3727_s0 + $0x120] sm:$0xff] }
  0x11   :  { %v2605_v7 = vld [vmem:[%s3727_s0 + $0x1f0] sm:$0xff]  ;;  %v2631_v8 = vld [vmem:[%s3727_s0 + $0x2c0] sm:$0xff] }
  0x12   :  { %1108 = vmatpush.bf16.msra.mxu0 %v2648_v9  ;;  %2816 = vmatpush.bf16.msra.mxu1 %v2648_v9 }
  0x13   :  { %2817 = vmatpush.bf16.msra.mxu2 %v2648_v9  ;;  %2818 = vmatpush.bf16.msra.mxu3 %v2648_v9 }
  0x16   :  { %1109 = vmatpush.bf16.msra.mxu0 %v2647_v10  ;;  %2819 = vmatpush.bf16.msra.mxu1 %v2647_v10 }
  0x17   :  { %2820 = vmatpush.bf16.msra.mxu2 %v2647_v10  ;;  %2821 = vmatpush.bf16.msra.mxu3 %v2647_v10 }
  0x19   :  { %2439 = vmatmul.msk.bf16.vlgmr.msra.gmra.mxu0 %vm782_vm2, %v2543_v11  ;;  %2465 = vmatmul.msk.bf16.vlgmr.msra.gmra.mxu1 %vm782_vm2, %v2569_v12 }
  0x1a   :  { %2491 = vmatmul.msk.bf16.vlgmr.msra.gmra.mxu2 %vm782_vm2, %v2595_v13  ;;  %2517 = vmatmul.msk.bf16.vlgmr.msra.gmra.mxu3 %vm782_vm2, %v2621_v14 }
  0x29   :  { %2440 = vmatmul.msk.bf16.gmra.mxu0 %vm782_vm2, %v2544_v15  ;;  %2466 = vmatmul.msk.bf16.gmra.mxu1 %vm782_vm2, %v2570_v16  ;;  %v2554_v15 = vld [vmem:[%s3727_s0 + $0x58] sm:$0xff]  ;;  %v2580_v16 = vld [vmem:[%s3727_s0 + $0x128] sm:$0xff] }
  0x2a   :  { %2492 = vmatmul.msk.bf16.gmra.mxu2 %vm782_vm2, %v2596_v17  ;;  %2518 = vmatmul.msk.bf16.gmra.mxu3 %vm782_vm2, %v2622_v18 }
  0x39   :  { %2441 = vmatmul.msk.bf16.gmra.mxu0 %vm782_vm2, %v2545_v19  ;;  %2467 = vmatmul.msk.bf16.gmra.mxu1 %vm782_vm2, %v2571_v20  ;;  %v2606_v19 = vld [vmem:[%s3727_s0 + $0x1f8] sm:$0xff]  ;;  %v2632_v20 = vld [vmem:[%s3727_s0 + $0x2c8] sm:$0xff] }
  0x3a   :  { %2493 = vmatmul.msk.bf16.gmra.mxu2 %vm782_vm2, %v2597_v21  ;;  %2519 = vmatmul.msk.bf16.gmra.mxu3 %vm782_vm2, %v2623_v22 }
  0x49   :  { %2442 = vmatmul.msk.bf16.gmra.mxu0 %vm782_vm2, %v2546_v23  ;;  %2468 = vmatmul.msk.bf16.gmra.mxu1 %vm782_vm2, %v2572_v24 }
  0x4a   :  { %2494 = vmatmul.msk.bf16.gmra.mxu2 %vm782_vm2, %v2598_v25  ;;  %2520 = vmatmul.msk.bf16.gmra.mxu3 %vm782_vm2, %v2624_v26 }
  0x59   :  { %2443 = vmatmul.msk.bf16.gmra.mxu0 %vm782_vm2, %v2547_v27  ;;  %2469 = vmatmul.msk.bf16.gmra.mxu1 %vm782_vm2, %v2573_v28  ;;  %v2555_v27 = vld [vmem:[%s3727_s0 + $0x60] sm:$0xff]  ;;  %v2581_v28 = vld [vmem:[%s3727_s0 + $0x130] sm:$0xff] }
  0x5a   :  { %2495 = vmatmul.msk.bf16.gmra.mxu2 %vm782_vm2, %v2599_v29  ;;  %2521 = vmatmul.msk.bf16.gmra.mxu3 %vm782_vm2, %v2625_v30 }
  0x69   :  { %2444 = vmatmul.msk.bf16.gmra.mxu0 %vm782_vm2, %v2548_v31  ;;  %2470 = vmatmul.msk.bf16.gmra.mxu1 %vm782_vm2, %v2574_v32  ;;  %v2607_v31 = vld [vmem:[%s3727_s0 + $0x200] sm:$0xff]  ;;  %v2633_v32 = vld [vmem:[%s3727_s0 + $0x2d0] sm:$0xff] }
  0x6a   :  { %2496 = vmatmul.msk.bf16.gmra.mxu2 %vm782_vm2, %v2600_v33  ;;  %2522 = vmatmul.msk.bf16.gmra.mxu3 %vm782_vm2, %v2626_v34 }
  0x79   :  { %2445 = vmatmul.msk.bf16.gmra.mxu0 %vm782_vm2, %v2549_v35  ;;  %2471 = vmatmul.msk.bf16.gmra.mxu1 %vm782_vm2, %v2575_v36 }
  0x7a   :  { %2497 = vmatmul.msk.bf16.gmra.mxu2 %vm782_vm2, %v2601_v37  ;;  %2523 = vmatmul.msk.bf16.gmra.mxu3 %vm782_vm2, %v2627_v38 }
  0x89   :  { %2446 = vmatmul.msk.bf16.gmra.mxu0 %vm782_vm2, %v2550_v39  ;;  %2472 = vmatmul.msk.bf16.gmra.mxu1 %vm782_vm2, %v2576_v40  ;;  %v2556_v39 = vld [vmem:[%s3727_s0 + $0x68] sm:$0xff]  ;;  %v2582_v40 = vld [vmem:[%s3727_s0 + $0x138] sm:$0xff] }
  0x8a   :  { %2498 = vmatmul.msk.bf16.gmra.mxu2 %vm782_vm2, %v2602_v41  ;;  %2524 = vmatmul.msk.bf16.gmra.mxu3 %vm782_vm2, %v2628_v42 }
  0x96   :  { %v2997_v45 = vpop.f32.mrf.mxu0  ;;  %v2999_v46 = vpop.f32.mrf.mxu1 }
  0x99   :  { %2447 = vmatmul.msk.bf16.gmra.mxu0 %vm782_vm2, %v2551_v43  ;;  %2473 = vmatmul.msk.bf16.gmra.mxu1 %vm782_vm2, %v2577_v44  ;;  %v2608_v43 = vld [vmem:[%s3727_s0 + $0x208] sm:$0xff]  ;;  %v2634_v44 = vld [vmem:[%s3727_s0 + $0x2d8] sm:$0xff] }
  0x9a   :  { %2499 = vmatmul.msk.bf16.gmra.mxu2 %vm782_vm2, %v2603_v47  ;;  %2525 = vmatmul.msk.bf16.gmra.mxu3 %vm782_vm2, %v2629_v48 }
  0x9d   :  { %v3011_v49 = vpop.f32.mrf.mxu2  ;;  %v3013_v50 = vpop.f32.mrf.mxu3 }
  0x9e   :  { %v3015_v51 = vpop.f32.mrf.mxu0  ;;  %v3017_v52 = vpop.f32.mrf.mxu1 }
  0xa5   :  { %v3019_v53 = vpop.f32.mrf.mxu2  ;;  %v3021_v54 = vpop.f32.mrf.mxu3 }
  0xa6   :  { %v3029_v57 = vpop.f32.mrf.mxu0  ;;  %v3031_v58 = vpop.f32.mrf.mxu1 }
  0xa9   :  { %2448 = vmatmul.msk.bf16.gmra.mxu0 %vm782_vm2, %v2552_v55  ;;  %2474 = vmatmul.msk.bf16.gmra.mxu1 %vm782_vm2, %v2578_v56 }
  0xaa   :  { %2500 = vmatmul.msk.bf16.gmra.mxu2 %vm782_vm2, %v2604_v59  ;;  %2526 = vmatmul.msk.bf16.gmra.mxu3 %vm782_vm2, %v2630_v60 }
  0xad   :  { %v3043_v61 = vpop.f32.mrf.mxu2  ;;  %v3045_v62 = vpop.f32.mrf.mxu3 }
  0xae   :  { %v3047_v63 = vpop.f32.mrf.mxu0  ;;  %v3049_v0 = vpop.f32.mrf.mxu1 }
  0xb5   :  { %v3051_v1 = vpop.f32.mrf.mxu2  ;;  %v3053_v2 = vpop.f32.mrf.mxu3 }
  0xb6   :  { %v3061_v5 = vpop.f32.mrf.mxu0  ;;  %v3063_v6 = vpop.f32.mrf.mxu1 }
  0xb9   :  { %2449 = vmatmul.msk.bf16.gmra.mxu0 %vm782_vm2, %v2553_v3  ;;  %2475 = vmatmul.msk.bf16.gmra.mxu1 %vm782_vm2, %v2579_v4  ;;  %v2557_v3 = vld [vmem:[%s3727_s0 + $0x70] sm:$0xff]  ;;  %v2583_v4 = vld [vmem:[%s3727_s0 + $0x140] sm:$0xff] }
  0xba   :  { %2501 = vmatmul.msk.bf16.gmra.mxu2 %vm782_vm2, %v2605_v7  ;;  %2527 = vmatmul.msk.bf16.gmra.mxu3 %vm782_vm2, %v2631_v8 }
  0xbd   :  { %v3075_v9 = vpop.f32.mrf.mxu2  ;;  %v3077_v10 = vpop.f32.mrf.mxu3 }
  0xbe   :  { %v3079_v11 = vpop.f32.mrf.mxu0  ;;  %v3081_v12 = vpop.f32.mrf.mxu1 }
  0xc5   :  { %v3083_v13 = vpop.f32.mrf.mxu2  ;;  %v3085_v14 = vpop.f32.mrf.mxu3 }
  0xc6   :  { %v3093_v17 = vpop.f32.mrf.mxu0  ;;  %v3095_v18 = vpop.f32.mrf.mxu1 }
  0xc9   :  { %2450 = vmatmul.msk.bf16.gmra.mxu0 %vm782_vm2, %v2554_v15  ;;  %2476 = vmatmul.msk.bf16.gmra.mxu1 %vm782_vm2, %v2580_v16  ;;  %v2609_v15 = vld [vmem:[%s3727_s0 + $0x210] sm:$0xff]  ;;  %v2635_v16 = vld [vmem:[%s3727_s0 + $0x2e0] sm:$0xff] }
  0xca   :  { %2502 = vmatmul.msk.bf16.gmra.mxu2 %vm782_vm2, %v2606_v19  ;;  %2528 = vmatmul.msk.bf16.gmra.mxu3 %vm782_vm2, %v2632_v20 }
  0xcd   :  { %v3107_v21 = vpop.f32.mrf.mxu2  ;;  %v3109_v22 = vpop.f32.mrf.mxu3 }
  0xce   :  { %v3111_v23 = vpop.f32.mrf.mxu0  ;;  %v3113_v24 = vpop.f32.mrf.mxu1 }
  0xd5   :  { %v3115_v25 = vpop.f32.mrf.mxu2  ;;  %v3117_v26 = vpop.f32.mrf.mxu3 }
  0xd6   :  { %v3125_v29 = vpop.f32.mrf.mxu0  ;;  %v3127_v30 = vpop.f32.mrf.mxu1 }
  0xd9   :  { %2451 = vmatmul.msk.bf16.gmra.mxu0 %vm782_vm2, %v2555_v27  ;;  %2477 = vmatmul.msk.bf16.gmra.mxu1 %vm782_vm2, %v2581_v28 }
  0xda   :  { %2503 = vmatmul.msk.bf16.gmra.mxu2 %vm782_vm2, %v2607_v31  ;;  %2529 = vmatmul.msk.bf16.gmra.mxu3 %vm782_vm2, %v2633_v32 }
  0xdd   :  { %v3139_v33 = vpop.f32.mrf.mxu2  ;;  %v3141_v34 = vpop.f32.mrf.mxu3 }
  0xde   :  { %v3143_v35 = vpop.f32.mrf.mxu0  ;;  %v3145_v36 = vpop.f32.mrf.mxu1 }
  0xe5   :  { %v3147_v37 = vpop.f32.mrf.mxu2  ;;  %v3149_v38 = vpop.f32.mrf.mxu3 }
  0xe6   :  { %v3157_v41 = vpop.f32.mrf.mxu0  ;;  %v3159_v42 = vpop.f32.mrf.mxu1 }
  0xe9   :  { %2452 = vmatmul.msk.bf16.gmra.mxu0 %vm782_vm2, %v2556_v39  ;;  %2478 = vmatmul.msk.bf16.gmra.mxu1 %vm782_vm2, %v2582_v40  ;;  %v2558_v39 = vld [vmem:[%s3727_s0 + $0x78] sm:$0xff]  ;;  %v2584_v40 = vld [vmem:[%s3727_s0 + $0x148] sm:$0xff] }
  0xea   :  { %2504 = vmatmul.msk.bf16.gmra.mxu2 %vm782_vm2, %v2608_v43  ;;  %2530 = vmatmul.msk.bf16.gmra.mxu3 %vm782_vm2, %v2634_v44 }
  0xed   :  { %v3171_v47 = vpop.f32.mrf.mxu2  ;;  %v3173_v48 = vpop.f32.mrf.mxu3 }
  0xee   :  { %v3175_v55 = vpop.f32.mrf.mxu0  ;;  %v3177_v56 = vpop.f32.mrf.mxu1 }
  0xf5   :  { %v3179_v59 = vpop.f32.mrf.mxu2  ;;  %v3181_v60 = vpop.f32.mrf.mxu3 }
  0xf6   :  { %v3189_v7 = vpop.f32.mrf.mxu0  ;;  %v3191_v8 = vpop.f32.mrf.mxu1 }
  0xf7   :  { %3730 = vst [vmem:[#allocation2_spill] sm:$0xff] %v3189_v7 }
  0xf8   :  { %3731 = vst [vmem:[#allocation3_spill] sm:$0xff] %v3191_v8 }
  0xf9   :  { %2453 = vmatmul.msk.bf16.gmra.mxu0 %vm782_vm2, %v2557_v3  ;;  %2479 = vmatmul.msk.bf16.gmra.mxu1 %vm782_vm2, %v2583_v4  ;;  %v2610_v3 = vld [vmem:[%s3727_s0 + $0x218] sm:$0xff]  ;;  %v2636_v4 = vld [vmem:[%s3727_s0 + $0x2e8] sm:$0xff] }
  0xfa   :  { %2505 = vmatmul.msk.bf16.gmra.mxu2 %vm782_vm2, %v2609_v15  ;;  %2531 = vmatmul.msk.bf16.gmra.mxu3 %vm782_vm2, %v2635_v16 }
  0xfd   :  { %v3203_v19 = vpop.f32.mrf.mxu2  ;;  %v3205_v20 = vpop.f32.mrf.mxu3 }
  0xfe   :  { %3732 = vst [vmem:[#allocation4_spill] sm:$0xff] %v3203_v19  ;;  %v3207_v27 = vpop.f32.mrf.mxu0  ;;  %v3209_v28 = vpop.f32.mrf.mxu1 }
  0xff   :  { %3733 = vst [vmem:[#allocation5_spill] sm:$0xff] %v3205_v20 }
 0x100   :  { %3734 = vst [vmem:[#allocation6_spill] sm:$0xff] %v3207_v27 }
 0x101   :  { %3735 = vst [vmem:[#allocation7_spill] sm:$0xff] %v3209_v28 }
 0x105   :  { %v3211_v31 = vpop.f32.mrf.mxu2  ;;  %v3213_v32 = vpop.f32.mrf.mxu3 }
 0x106   :  { %3736 = vst [vmem:[#allocation8_spill] sm:$0xff] %v3211_v31  ;;  %v3221_v43 = vpop.f32.mrf.mxu0  ;;  %v3223_v44 = vpop.f32.mrf.mxu1 }
 0x107   :  { %3737 = vst [vmem:[#allocation9_spill] sm:$0xff] %v3213_v32 }
 0x108   :  { %3738 = vst [vmem:[#allocation10_spill] sm:$0xff] %v3221_v43 }
 0x109   :  { %3739 = vst [vmem:[#allocation11_spill] sm:$0xff] %v3223_v44  ;;  %2454 = vmatmul.msk.bf16.gmra.mxu0 %vm782_vm2, %v2558_v39  ;;  %2480 = vmatmul.msk.bf16.gmra.mxu1 %vm782_vm2, %v2584_v40  ;;  %v2559_v39 = vld [vmem:[%s3727_s0 + $0x80] sm:$0xff]  ;;  %v2585_v40 = vld [vmem:[%s3727_s0 + $0x150] sm:$0xff] }
 0x10a   :  { %2506 = vmatmul.msk.bf16.gmra.mxu2 %vm782_vm2, %v2610_v3  ;;  %2532 = vmatmul.msk.bf16.gmra.mxu3 %vm782_vm2, %v2636_v4 }
 0x10d   :  { %v3235_v15 = vpop.f32.mrf.mxu2  ;;  %v3237_v16 = vpop.f32.mrf.mxu3 }
 0x10e   :  { %3740 = vst [vmem:[#allocation12_spill] sm:$0xff] %v3235_v15  ;;  %v3239_v44 = vpop.f32.mrf.mxu0  ;;  %v3241_v43 = vpop.f32.mrf.mxu1 }
 0x10f   :  { %3741 = vst [vmem:[#allocation13_spill] sm:$0xff] %v3237_v16  ;;  %v2611_v16 = vld [vmem:[%s3727_s0 + $0x220] sm:$0xff] }
 0x110   :  { %3742 = vst [vmem:[#allocation14_spill] sm:$0xff] %v3239_v44 }
 0x111   :  { %3743 = vst [vmem:[#allocation15_spill] sm:$0xff] %v3241_v43 }
 0x115   :  { %v3243_v32 = vpop.f32.mrf.mxu2  ;;  %v3245_v31 = vpop.f32.mrf.mxu3 }
 0x116   :  { %3744 = vst [vmem:[#allocation16_spill] sm:$0xff] %v3243_v32  ;;  %v3253_v3 = vpop.f32.mrf.mxu0  ;;  %v3255_v4 = vpop.f32.mrf.mxu1 }
 0x117   :  { %3745 = vst [vmem:[#allocation17_spill] sm:$0xff] %v3245_v31  ;;  %v2637_v31 = vld [vmem:[%s3727_s0 + $0x2f0] sm:$0xff] }
 0x118   :  { %3746 = vst [vmem:[#allocation18_spill] sm:$0xff] %v3253_v3 }
 0x119   :  { %3747 = vst [vmem:[#allocation19_spill] sm:$0xff] %v3255_v4  ;;  %2455 = vmatmul.msk.bf16.gmra.mxu0 %vm782_vm2, %v2559_v39  ;;  %2481 = vmatmul.msk.bf16.gmra.mxu1 %vm782_vm2, %v2585_v40  ;;  %v2560_v39 = vld [vmem:[%s3727_s0 + $0x88] sm:$0xff] }
 0x11a   :  { %2507 = vmatmul.msk.bf16.gmra.mxu2 %vm782_vm2, %v2611_v16  ;;  %2533 = vmatmul.msk.bf16.gmra.mxu3 %vm782_vm2, %v2637_v31  ;;  %v2586_v31 = vld [vmem:[%s3727_s0 + $0x158] sm:$0xff] }
 0x11d   :  { %v3267_v32 = vpop.f32.mrf.mxu2  ;;  %v3269_v3 = vpop.f32.mrf.mxu3 }
 0x11e   :  { %3748 = vst [vmem:[#allocation20_spill] sm:$0xff] %v3267_v32  ;;  %v3271_v4 = vpop.f32.mrf.mxu0  ;;  %v3273_v15 = vpop.f32.mrf.mxu1 }
 0x11f   :  { %3749 = vst [vmem:[#allocation21_spill] sm:$0xff] %v3269_v3  ;;  %v2612_v3 = vld [vmem:[%s3727_s0 + $0x228] sm:$0xff] }
 0x120   :  { %3750 = vst [vmem:[#allocation22_spill] sm:$0xff] %v3271_v4 }
 0x121   :  { %3751 = vst [vmem:[#allocation23_spill] sm:$0xff] %v3273_v15 }
 0x125   :  { %v3275_v43 = vpop.f32.mrf.mxu2  ;;  %v3277_v44 = vpop.f32.mrf.mxu3 }
 0x126   :  { %3752 = vst [vmem:[#allocation24_spill] sm:$0xff] %v3275_v43  ;;  %v3285_v16 = vpop.f32.mrf.mxu0  ;;  %v3287_v40 = vpop.f32.mrf.mxu1 }
 0x127   :  { %3753 = vst [vmem:[#allocation25_spill] sm:$0xff] %v3277_v44  ;;  %v2638_v44 = vld [vmem:[%s3727_s0 + $0x2f8] sm:$0xff] }
 0x128   :  { %3754 = vst [vmem:[#allocation26_spill] sm:$0xff] %v3285_v16 }
 0x129   :  { %3755 = vst [vmem:[#allocation27_spill] sm:$0xff] %v3287_v40  ;;  %2456 = vmatmul.msk.bf16.gmra.mxu0 %vm782_vm2, %v2560_v39  ;;  %2482 = vmatmul.msk.bf16.gmra.mxu1 %vm782_vm2, %v2586_v31  ;;  %v2561_v39 = vld [vmem:[%s3727_s0 + $0x90] sm:$0xff] }
 0x12a   :  { %2508 = vmatmul.msk.bf16.gmra.mxu2 %vm782_vm2, %v2612_v3  ;;  %2534 = vmatmul.msk.bf16.gmra.mxu3 %vm782_vm2, %v2638_v44  ;;  %v2587_v44 = vld [vmem:[%s3727_s0 + $0x160] sm:$0xff] }
 0x12d   :  { %v3299_v43 = vpop.f32.mrf.mxu2  ;;  %v3301_v16 = vpop.f32.mrf.mxu3 }
 0x12e   :  { %3756 = vst [vmem:[#allocation28_spill] sm:$0xff] %v3299_v43  ;;  %v3303_v40 = vpop.f32.mrf.mxu0  ;;  %v3305_v32 = vpop.f32.mrf.mxu1 }
 0x12f   :  { %3757 = vst [vmem:[#allocation29_spill] sm:$0xff] %v3301_v16  ;;  %v2613_v16 = vld [vmem:[%s3727_s0 + $0x230] sm:$0xff] }
 0x130   :  { %3758 = vst [vmem:[#allocation30_spill] sm:$0xff] %v3303_v40 }
 0x131   :  { %3759 = vst [vmem:[#allocation31_spill] sm:$0xff] %v3305_v32 }
 0x135   :  { %v3307_v15 = vpop.f32.mrf.mxu2  ;;  %v3309_v4 = vpop.f32.mrf.mxu3 }
 0x136   :  { %3760 = vst [vmem:[#allocation32_spill] sm:$0xff] %v3307_v15  ;;  %v3317_v3 = vpop.f32.mrf.mxu0  ;;  %v3319_v31 = vpop.f32.mrf.mxu1 }
 0x137   :  { %3761 = vst [vmem:[#allocation33_spill] sm:$0xff] %v3309_v4  ;;  %v2639_v4 = vld [vmem:[%s3727_s0 + $0x300] sm:$0xff] }
 0x138   :  { %3762 = vst [vmem:[#allocation34_spill] sm:$0xff] %v3317_v3 }
 0x139   :  { %3763 = vst [vmem:[#allocation35_spill] sm:$0xff] %v3319_v31  ;;  %2457 = vmatmul.msk.bf16.gmra.mxu0 %vm782_vm2, %v2561_v39  ;;  %2483 = vmatmul.msk.bf16.gmra.mxu1 %vm782_vm2, %v2587_v44  ;;  %v2562_v39 = vld [vmem:[%s3727_s0 + $0x98] sm:$0xff] }
 0x13a   :  { %2509 = vmatmul.msk.bf16.gmra.mxu2 %vm782_vm2, %v2613_v16  ;;  %2535 = vmatmul.msk.bf16.gmra.mxu3 %vm782_vm2, %v2639_v4  ;;  %v2588_v4 = vld [vmem:[%s3727_s0 + $0x168] sm:$0xff] }
 0x13d   :  { %v3331_v15 = vpop.f32.mrf.mxu2  ;;  %v3333_v3 = vpop.f32.mrf.mxu3 }
 0x13e   :  { %3764 = vst [vmem:[#allocation36_spill] sm:$0xff] %v3331_v15  ;;  %v3335_v31 = vpop.f32.mrf.mxu0  ;;  %v3337_v43 = vpop.f32.mrf.mxu1 }
 0x13f   :  { %3765 = vst [vmem:[#allocation37_spill] sm:$0xff] %v3333_v3  ;;  %v2614_v3 = vld [vmem:[%s3727_s0 + $0x238] sm:$0xff] }
 0x140   :  { %3766 = vst [vmem:[#allocation38_spill] sm:$0xff] %v3335_v31 }
 0x141   :  { %3767 = vst [vmem:[#allocation39_spill] sm:$0xff] %v3337_v43 }
 0x145   :  { %v3339_v32 = vpop.f32.mrf.mxu2  ;;  %v3341_v40 = vpop.f32.mrf.mxu3 }
 0x146   :  { %3768 = vst [vmem:[#allocation40_spill] sm:$0xff] %v3339_v32  ;;  %v3349_v16 = vpop.f32.mrf.mxu0  ;;  %v3351_v44 = vpop.f32.mrf.mxu1 }
 0x147   :  { %3769 = vst [vmem:[#allocation41_spill] sm:$0xff] %v3341_v40  ;;  %v2640_v40 = vld [vmem:[%s3727_s0 + $0x308] sm:$0xff] }
 0x148   :  { %3770 = vst [vmem:[#allocation42_spill] sm:$0xff] %v3349_v16 }
 0x149   :  { %3771 = vst [vmem:[#allocation43_spill] sm:$0xff] %v3351_v44  ;;  %2458 = vmatmul.msk.bf16.gmra.mxu0 %vm782_vm2, %v2562_v39  ;;  %2484 = vmatmul.msk.bf16.gmra.mxu1 %vm782_vm2, %v2588_v4  ;;  %v2563_v39 = vld [vmem:[%s3727_s0 + $0xa0] sm:$0xff] }
 0x14a   :  { %2510 = vmatmul.msk.bf16.gmra.mxu2 %vm782_vm2, %v2614_v3  ;;  %2536 = vmatmul.msk.bf16.gmra.mxu3 %vm782_vm2, %v2640_v40  ;;  %v2589_v40 = vld [vmem:[%s3727_s0 + $0x170] sm:$0xff] }
 0x14d   :  { %v3363_v32 = vpop.f32.mrf.mxu2  ;;  %v3365_v16 = vpop.f32.mrf.mxu3 }
 0x14e   :  { %3772 = vst [vmem:[#allocation44_spill] sm:$0xff] %v3363_v32  ;;  %v3367_v44 = vpop.f32.mrf.mxu0  ;;  %v3369_v15 = vpop.f32.mrf.mxu1 }
 0x14f   :  { %3773 = vst [vmem:[#allocation45_spill] sm:$0xff] %v3365_v16  ;;  %v2615_v16 = vld [vmem:[%s3727_s0 + $0x240] sm:$0xff] }
 0x150   :  { %3774 = vst [vmem:[#allocation46_spill] sm:$0xff] %v3367_v44 }
 0x151   :  { %3775 = vst [vmem:[#allocation47_spill] sm:$0xff] %v3369_v15 }
 0x155   :  { %v3371_v43 = vpop.f32.mrf.mxu2  ;;  %v3373_v31 = vpop.f32.mrf.mxu3 }
 0x156   :  { %3776 = vst [vmem:[#allocation48_spill] sm:$0xff] %v3371_v43  ;;  %v3381_v3 = vpop.f32.mrf.mxu0  ;;  %v3383_v4 = vpop.f32.mrf.mxu1 }
 0x157   :  { %3777 = vst [vmem:[#allocation49_spill] sm:$0xff] %v3373_v31  ;;  %v2641_v31 = vld [vmem:[%s3727_s0 + $0x310] sm:$0xff] }
 0x158   :  { %3778 = vst [vmem:[#allocation50_spill] sm:$0xff] %v3381_v3 }
 0x159   :  { %3779 = vst [vmem:[#allocation51_spill] sm:$0xff] %v3383_v4  ;;  %2459 = vmatmul.msk.bf16.gmra.mxu0 %vm782_vm2, %v2563_v39  ;;  %2485 = vmatmul.msk.bf16.gmra.mxu1 %vm782_vm2, %v2589_v40  ;;  %v2564_v39 = vld [vmem:[%s3727_s0 + $0xa8] sm:$0xff] }
 0x15a   :  { %2511 = vmatmul.msk.bf16.gmra.mxu2 %vm782_vm2, %v2615_v16  ;;  %2537 = vmatmul.msk.bf16.gmra.mxu3 %vm782_vm2, %v2641_v31  ;;  %v2590_v31 = vld [vmem:[%s3727_s0 + $0x178] sm:$0xff] }
 0x15d   :  { %v3395_v43 = vpop.f32.mrf.mxu2  ;;  %v3397_v3 = vpop.f32.mrf.mxu3 }
 0x15e   :  { %3780 = vst [vmem:[#allocation52_spill] sm:$0xff] %v3395_v43  ;;  %v3399_v4 = vpop.f32.mrf.mxu0  ;;  %v3401_v32 = vpop.f32.mrf.mxu1 }
 0x15f   :  { %3781 = vst [vmem:[#allocation53_spill] sm:$0xff] %v3397_v3  ;;  %v2616_v3 = vld [vmem:[%s3727_s0 + $0x248] sm:$0xff] }
 0x160   :  { %3782 = vst [vmem:[#allocation54_spill] sm:$0xff] %v3399_v4  ;;  %v3428_v4 = vld [vmem:[%s3728_s2] ss:$0 sm:$0xff] }
 0x161   :  { %3783 = vst [vmem:[#allocation55_spill] sm:$0xff] %v3401_v32 }
 0x165   :  { %v3403_v15 = vpop.f32.mrf.mxu2  ;;  %v3405_v44 = vpop.f32.mrf.mxu3 }
 0x166   :  { %3784 = vst [vmem:[#allocation56_spill] sm:$0xff] %v3403_v15  ;;  %v1176_v16 = vpop.f32.mrf.mxu0  ;;  %v1306_v40 = vpop.f32.mrf.mxu1  ;;  %v2642_v15 = vld [vmem:[%s3727_s0 + $0x318] sm:$0xff] }
 0x167   :  { %3785 = vst [vmem:[#allocation57_spill] sm:$0xff] %v3405_v44  ;;  %v1631_v44 = vmax.f32 %v2997_v45, %v1176_v16  ;;  %v1683_v43 = vmax.f32 %v2999_v46, %v1306_v40 }
 0x169   :  { %2460 = vmatmul.msk.bf16.gmra.mxu0 %vm782_vm2, %v2564_v39  ;;  %2486 = vmatmul.msk.bf16.gmra.mxu1 %vm782_vm2, %v2590_v31  ;;  %v1735_v32 = vmax.f32 %v1631_v44, %v1683_v43 }
 0x16a   :  { %2512 = vmatmul.msk.bf16.gmra.mxu2 %vm782_vm2, %v2616_v3  ;;  %2538 = vmatmul.msk.bf16.gmra.mxu3 %vm782_vm2, %v2642_v15 }
 0x16b   :  { %v1791_v15 = vadd.f32 %v3428_v4, %v1735_v32  ;;  %v2643_v32 = vld [vmem:[%s3727_s0 + $0x320] sm:$0xff] }
 0x16d   :  { %v1436_v20 = vpop.f32.mrf.mxu2  ;;  %v1566_v19 = vpop.f32.mrf.mxu3  ;;  %v1843_v40 = vmax.f32 %v1791_v15, 0.0 }
 0x16e   :  { %v1178_v28 = vpop.f32.mrf.mxu0  ;;  %v1308_v45 = vpop.f32.mrf.mxu1  ;;  %v1657_v31 = vmax.f32 %v3011_v49, %v1436_v20  ;;  %v1709_v3 = vmax.f32 %v3013_v50, %v1566_v19  ;;  %v2591_v49 = vld [vmem:[%s3727_s0 + $0x180] sm:$0xff] }
 0x16f   :  { %v1632_v46 = vmax.f32 %v3015_v51, %v1178_v28  ;;  %v1684_v39 = vmax.f32 %v3017_v52, %v1308_v45  ;;  %v2565_v51 = vld [vmem:[%s3727_s0 + $0xb0] sm:$0xff] }
 0x170   :  { %v1761_v16 = vmax.f32 %v1657_v31, %v1709_v3  ;;  %v2617_v28 = vld [vmem:[%s3727_s0 + $0x250] sm:$0xff] }
 0x171   :  { %v1736_v43 = vmax.f32 %v1632_v46, %v1684_v39 }
 0x172   :  { %v1817_v46 = vadd.f32 %v3428_v4, %v1761_v16 }
 0x173   :  { %v1792_v44 = vadd.f32 %v3428_v4, %v1736_v43 }
 0x175   :  { %v1844_v27 = vmax.f32 %v1792_v44, 0.0  ;;  %v1438_v8 = vpop.f32.mrf.mxu2  ;;  %v1568_v7 = vpop.f32.mrf.mxu3 }
 0x176   :  { %v1658_v50 = vmax.f32 %v3019_v53, %v1438_v8  ;;  %v1710_v52 = vmax.f32 %v3021_v54, %v1568_v7  ;;  %v1181_v19 = vpop.f32.mrf.mxu0  ;;  %v1311_v20 = vpop.f32.mrf.mxu1  ;;  %v1869_v8 = vmax.f32 %v1817_v46, 0.0 }
 0x177   :  { %v2655_v45 = vpack.c.bf16 %v1844_v27, %v1843_v40  ;;  %v1633_v53 = vmax.f32 %v3029_v57, %v1181_v19  ;;  %v1685_v54 = vmax.f32 %v3031_v58, %v1311_v20 }
 0x178   :  { %v1762_v39 = vmax.f32 %v1658_v50, %v1710_v52 }
 0x179   :  { %2656 = vst [vmem:[%s3729_s3] sm:$0xff] %v2655_v45   ;;  %2461 = vmatmul.msk.bf16.gmra.mxu0 %vm782_vm2, %v2565_v51  ;;  %2487 = vmatmul.msk.bf16.gmra.mxu1 %vm782_vm2, %v2591_v49  ;;  %v1737_v31 = vmax.f32 %v1633_v53, %v1685_v54  ;;  %v2618_v53 = vld [vmem:[%s3727_s0 + $0x258] sm:$0xff]  ;;  %v2644_v54 = vld [vmem:[%s3727_s0 + $0x328] sm:$0xff] }
 0x17a   :  { %v1818_v7 = vadd.f32 %v3428_v4, %v1762_v39  ;;  %2513 = vmatmul.msk.bf16.gmra.mxu2 %vm782_vm2, %v2617_v28  ;;  %2539 = vmatmul.msk.bf16.gmra.mxu3 %vm782_vm2, %v2643_v32 }
 0x17b   :  { %v1793_v49 = vadd.f32 %v3428_v4, %v1737_v31 }
 0x17c   :  { %v1870_v27 = vmax.f32 %v1818_v7, 0.0 }
 0x17d   :  { %v1441_v3 = vpop.f32.mrf.mxu2  ;;  %v1571_v15 = vpop.f32.mrf.mxu3  ;;  %v1845_v20 = vmax.f32 %v1793_v49, 0.0 }
 0x17e   :  { %v2720_v43 = vpack.c.bf16 %v1870_v27, %v1869_v8  ;;  %v1183_v44 = vpop.f32.mrf.mxu0  ;;  %v1313_v57 = vpop.f32.mrf.mxu1  ;;  %v1659_v40 = vmax.f32 %v3043_v61, %v1441_v3  ;;  %v1711_v51 = vmax.f32 %v3045_v62, %v1571_v15  ;;  %v2592_v61 = vld [vmem:[%s3727_s0 + $0x188] sm:$0xff] }
 0x17f   :  { %v1634_v58 = vmax.f32 %v3047_v63, %v1183_v44  ;;  %v1686_v16 = vmax.f32 %v3049_v0, %v1313_v57  ;;  %v2566_v0 = vld [vmem:[%s3727_s0 + $0xb8] sm:$0xff] }
 0x180   :  { %2794 = vst [vmem:[%s3729_s3 + $0x68] sm:$0xff] %v2720_v43   ;;  %v1763_v19 = vmax.f32 %v1659_v40, %v1711_v51 }
 0x181   :  { %v1738_v50 = vmax.f32 %v1634_v58, %v1686_v16 }
 0x182   :  { %v1819_v8 = vadd.f32 %v3428_v4, %v1763_v19 }
 0x183   :  { %v1794_v52 = vadd.f32 %v3428_v4, %v1738_v50 }
 0x184   :  { %v1871_v3 = vmax.f32 %v1819_v8, 0.0 }
 0x185   :  { %v1846_v28 = vmax.f32 %v1794_v52, 0.0  ;;  %v1443_v32 = vpop.f32.mrf.mxu2  ;;  %v1573_v63 = vpop.f32.mrf.mxu3 }
 0x186   :  { %v1660_v62 = vmax.f32 %v3051_v1, %v1443_v32  ;;  %v1712_v45 = vmax.f32 %v3053_v2, %v1573_v63  ;;  %v1186_v46 = vpop.f32.mrf.mxu0  ;;  %v1316_v39 = vpop.f32.mrf.mxu1 }
 0x187   :  { %v2660_v7 = vpack.c.bf16 %v1846_v28, %v1845_v20  ;;  %v1635_v1 = vmax.f32 %v3061_v5, %v1186_v46  ;;  %v1687_v2 = vmax.f32 %v3063_v6, %v1316_v39  ;;  %v2645_v46 = vld [vmem:[%s3727_s0 + $0x330] sm:$0xff] }
 0x188   :  { %v1764_v27 = vmax.f32 %v1660_v62, %v1712_v45  ;;  %v2619_v45 = vld [vmem:[%s3727_s0 + $0x260] sm:$0xff] }
 0x189   :  { %2782 = vst [vmem:[%s3729_s3 + $0x8] sm:$0xff] %v2660_v7   ;;  %2462 = vmatmul.msk.bf16.gmra.mxu0 %vm782_vm2, %v2566_v0  ;;  %2488 = vmatmul.msk.bf16.gmra.mxu1 %vm782_vm2, %v2592_v61  ;;  %v1739_v43 = vmax.f32 %v1635_v1, %v1687_v2 }
 0x18a   :  { %v1820_v31 = vadd.f32 %v3428_v4, %v1764_v27  ;;  %2514 = vmatmul.msk.bf16.gmra.mxu2 %vm782_vm2, %v2618_v53  ;;  %2540 = vmatmul.msk.bf16.gmra.mxu3 %vm782_vm2, %v2644_v54 }
 0x18b   :  { %v1795_v50 = vadd.f32 %v3428_v4, %v1739_v43 }
 0x18c   :  { %v1872_v15 = vmax.f32 %v1820_v31, 0.0 }
 0x18d   :  { %v1446_v44 = vpop.f32.mrf.mxu2  ;;  %v1576_v57 = vpop.f32.mrf.mxu3  ;;  %v1847_v28 = vmax.f32 %v1795_v50, 0.0 }
 0x18e   :  { %v2725_v58 = vpack.c.bf16 %v1872_v15, %v1871_v3  ;;  %v1188_v16 = vpop.f32.mrf.mxu0  ;;  %v1318_v5 = vpop.f32.mrf.mxu1  ;;  %v1661_v51 = vmax.f32 %v3075_v9, %v1446_v44  ;;  %v1713_v49 = vmax.f32 %v3077_v10, %v1576_v57  ;;  %v2593_v9 = vld [vmem:[%s3727_s0 + $0x190] sm:$0xff] }
 0x18f   :  { %v1636_v6 = vmax.f32 %v3079_v11, %v1188_v16  ;;  %v1688_v40 = vmax.f32 %v3081_v12, %v1318_v5  ;;  %v2567_v12 = vld [vmem:[%s3727_s0 + $0xc0] sm:$0xff] }
 0x190   :  { %2795 = vst [vmem:[%s3729_s3 + $0x70] sm:$0xff] %v2725_v58   ;;  %v1765_v20 = vmax.f32 %v1661_v51, %v1713_v49 }
 0x191   :  { %v1740_v52 = vmax.f32 %v1636_v6, %v1688_v40 }
 0x192   :  { %v1821_v53 = vadd.f32 %v3428_v4, %v1765_v20  ;;  %v2620_v20 = vld [vmem:[%s3727_s0 + $0x268] sm:$0xff] }
 0x193   :  { %v1796_v19 = vadd.f32 %v3428_v4, %v1740_v52 }
 0x194   :  { %v1873_v8 = vmax.f32 %v1821_v53, 0.0 }
 0x195   :  { %v1848_v32 = vmax.f32 %v1796_v19, 0.0  ;;  %v1448_v63 = vpop.f32.mrf.mxu2  ;;  %v1578_v11 = vpop.f32.mrf.mxu3 }
 0x196   :  { %v1662_v10 = vmax.f32 %v3083_v13, %v1448_v63  ;;  %v1714_v0 = vmax.f32 %v3085_v14, %v1578_v11  ;;  %v1191_v61 = vpop.f32.mrf.mxu0  ;;  %v1321_v62 = vpop.f32.mrf.mxu1 }
 0x197   :  { %v2665_v39 = vpack.c.bf16 %v1848_v32, %v1847_v28  ;;  %v1637_v13 = vmax.f32 %v3093_v17, %v1191_v61  ;;  %v1689_v14 = vmax.f32 %v3095_v18, %v1321_v62  ;;  %v2646_v28 = vld [vmem:[%s3727_s0 + $0x338] sm:$0xff] }
 0x198   :  { %v1766_v54 = vmax.f32 %v1662_v10, %v1714_v0 }
 0x199   :  { %2783 = vst [vmem:[%s3729_s3 + $0x10] sm:$0xff] %v2665_v39   ;;  %2463 = vmatmul.msk.bf16.gmra.mxu0 %vm782_vm2, %v2567_v12  ;;  %2489 = vmatmul.msk.bf16.gmra.mxu1 %vm782_vm2, %v2593_v9  ;;  %v1741_v1 = vmax.f32 %v1637_v13, %v1689_v14 }
 0x19a   :  { %v1822_v7 = vadd.f32 %v3428_v4, %v1766_v54  ;;  %2515 = vmatmul.msk.bf16.gmra.mxu2 %vm782_vm2, %v2619_v45  ;;  %2541 = vmatmul.msk.bf16.gmra.mxu3 %vm782_vm2, %v2645_v46 }
 0x19b   :  { %v1797_v58 = vadd.f32 %v3428_v4, %v1741_v1 }
 0x19c   :  { %v1874_v27 = vmax.f32 %v1822_v7, 0.0 }
 0x19d   :  { %v1451_v2 = vpop.f32.mrf.mxu2  ;;  %v1581_v31 = vpop.f32.mrf.mxu3  ;;  %v1849_v40 = vmax.f32 %v1797_v58, 0.0 }
 0x19e   :  { %v2730_v3 = vpack.c.bf16 %v1874_v27, %v1873_v8  ;;  %v1193_v15 = vpop.f32.mrf.mxu0  ;;  %v1323_v17 = vpop.f32.mrf.mxu1  ;;  %v1663_v44 = vmax.f32 %v3107_v21, %v1451_v2  ;;  %v1715_v57 = vmax.f32 %v3109_v22, %v1581_v31  ;;  %v2594_v21 = vld [vmem:[%s3727_s0 + $0x198] sm:$0xff] }
 0x19f   :  { %v1638_v18 = vmax.f32 %v3111_v23, %v1193_v15  ;;  %v1690_v43 = vmax.f32 %v3113_v24, %v1323_v17  ;;  %v2568_v24 = vld [vmem:[%s3727_s0 + $0xc8] sm:$0xff] }
 0x1a0   :  { %2796 = vst [vmem:[%s3729_s3 + $0x78] sm:$0xff] %v2730_v3   ;;  %v1767_v6 = vmax.f32 %v1663_v44, %v1715_v57 }
 0x1a1   :  { %v1742_v16 = vmax.f32 %v1638_v18, %v1690_v43 }
 0x1a2   :  { %v1823_v63 = vadd.f32 %v3428_v4, %v1767_v6 }
 0x1a3   :  { %v1798_v5 = vadd.f32 %v3428_v4, %v1742_v16 }
 0x1a4   :  { %v1875_v9 = vmax.f32 %v1823_v63, 0.0 }
 0x1a5   :  { %v1850_v51 = vmax.f32 %v1798_v5, 0.0  ;;  %v1453_v49 = vpop.f32.mrf.mxu2  ;;  %v1583_v23 = vpop.f32.mrf.mxu3 }
 0x1a6   :  { %v1664_v22 = vmax.f32 %v3115_v25, %v1453_v49  ;;  %v1716_v50 = vmax.f32 %v3117_v26, %v1583_v23  ;;  %v1196_v52 = vpop.f32.mrf.mxu0  ;;  %v1326_v19 = vpop.f32.mrf.mxu1 }
 0x1a7   :  { %v2670_v32 = vpack.c.bf16 %v1850_v51, %v1849_v40  ;;  %v1639_v25 = vmax.f32 %v3125_v29, %v1196_v52  ;;  %v1691_v26 = vmax.f32 %v3127_v30, %v1326_v19 }
 0x1a8   :  { %v1768_v11 = vmax.f32 %v1664_v22, %v1716_v50 }
 0x1a9   :  { %2784 = vst [vmem:[%s3729_s3 + $0x18] sm:$0xff] %v2670_v32   ;;  %2464 = vmatmul.msk.bf16.gmra.mxu0 %vm782_vm2, %v2568_v24  ;;  %2490 = vmatmul.msk.bf16.gmra.mxu1 %vm782_vm2, %v2594_v21  ;;  %v1743_v0 = vmax.f32 %v1639_v25, %v1691_v26  ;;  %v3787_v26 = vld [vmem:[#allocation3_spill] sm:$0xff] }
 0x1aa   :  { %v1824_v12 = vadd.f32 %v3428_v4, %v1768_v11  ;;  %2516 = vmatmul.msk.bf16.gmra.mxu2 %vm782_vm2, %v2620_v20  ;;  %2542 = vmatmul.msk.bf16.gmra.mxu3 %vm782_vm2, %v2646_v28  ;;  %v3786_v11 = vld [vmem:[#allocation2_spill] sm:$0xff] }
 0x1ab   :  { %v1799_v13 = vadd.f32 %v3428_v4, %v1743_v0 }
 0x1ac   :  { %v1876_v10 = vmax.f32 %v1824_v12, 0.0 }
 0x1ad   :  { %v1456_v61 = vpop.f32.mrf.mxu2  ;;  %v1586_v62 = vpop.f32.mrf.mxu3  ;;  %v1851_v27 = vmax.f32 %v1799_v13, 0.0 }
 0x1ae   :  { %v2735_v45 = vpack.c.bf16 %v1876_v10, %v1875_v9  ;;  %v1198_v46 = vpop.f32.mrf.mxu0  ;;  %v1328_v29 = vpop.f32.mrf.mxu1  ;;  %v1665_v53 = vmax.f32 %v3139_v33, %v1456_v61  ;;  %v1717_v54 = vmax.f32 %v3141_v34, %v1586_v62 }
 0x1af   :  { %v1640_v30 = vmax.f32 %v3143_v35, %v1198_v46  ;;  %v1692_v39 = vmax.f32 %v3145_v36, %v1328_v29  ;;  %v3788_v29 = vld [vmem:[#allocation6_spill] sm:$0xff] }
 0x1b0   :  { %2797 = vst [vmem:[%s3729_s3 + $0x80] sm:$0xff] %v2735_v45   ;;  %v1769_v8 = vmax.f32 %v1665_v53, %v1717_v54  ;;  %v3790_v54 = vld [vmem:[#allocation4_spill] sm:$0xff] }
 0x1b1   :  { %v1744_v14 = vmax.f32 %v1640_v30, %v1692_v39  ;;  %v3789_v39 = vld [vmem:[#allocation7_spill] sm:$0xff] }
 0x1b2   :  { %v1825_v33 = vadd.f32 %v3428_v4, %v1769_v8 }
 0x1b3   :  { %v1800_v7 = vadd.f32 %v3428_v4, %v1744_v14  ;;  %v3791_v14 = vld [vmem:[#allocation5_spill] sm:$0xff] }
 0x1b4   :  { %v1877_v57 = vmax.f32 %v1825_v33, 0.0  ;;  %v3793_v33 = vld [vmem:[#allocation9_spill] sm:$0xff] }
 0x1b5   :  { %v1852_v1 = vmax.f32 %v1800_v7, 0.0  ;;  %v1458_v2 = vpop.f32.mrf.mxu2  ;;  %v1588_v35 = vpop.f32.mrf.mxu3 }
 0x1b6   :  { %v1666_v36 = vmax.f32 %v3147_v37, %v1458_v2  ;;  %v1718_v31 = vmax.f32 %v3149_v38, %v1588_v35  ;;  %v1201_v3 = vpop.f32.mrf.mxu0  ;;  %v1331_v15 = vpop.f32.mrf.mxu1 }
 0x1b7   :  { %v2675_v17 = vpack.c.bf16 %v1852_v1, %v1851_v27  ;;  %v1641_v18 = vmax.f32 %v3157_v41, %v1201_v3  ;;  %v1693_v43 = vmax.f32 %v3159_v42, %v1331_v15  ;;  %v3792_v15 = vld [vmem:[#allocation8_spill] sm:$0xff] }
 0x1b8   :  { %v1770_v34 = vmax.f32 %v1666_v36, %v1718_v31 }
 0x1b9   :  { %2785 = vst [vmem:[%s3729_s3 + $0x20] sm:$0xff] %v2675_v17   ;;  %v1745_v58 = vmax.f32 %v1641_v18, %v1693_v43 }
 0x1ba   :  { %v1826_v44 = vadd.f32 %v3428_v4, %v1770_v34 }
 0x1bb   :  { %v1801_v23 = vadd.f32 %v3428_v4, %v1745_v58  ;;  %v3794_v58 = vld [vmem:[#allocation10_spill] sm:$0xff] }
 0x1bc   :  { %v1878_v37 = vmax.f32 %v1826_v44, 0.0 }
 0x1bd   :  { %v1461_v38 = vpop.f32.mrf.mxu2  ;;  %v1591_v16 = vpop.f32.mrf.mxu3  ;;  %v1853_v50 = vmax.f32 %v1801_v23, 0.0 }
 0x1be   :  { %v2740_v5 = vpack.c.bf16 %v1878_v37, %v1877_v57  ;;  %v1203_v6 = vpop.f32.mrf.mxu0  ;;  %v1333_v40 = vpop.f32.mrf.mxu1  ;;  %v1667_v41 = vmax.f32 %v3171_v47, %v1461_v38  ;;  %v1719_v42 = vmax.f32 %v3173_v48, %v1591_v16  ;;  %v3795_v16 = vld [vmem:[#allocation11_spill] sm:$0xff] }
 0x1bf   :  { %v1642_v51 = vmax.f32 %v3175_v55, %v1203_v6  ;;  %v1694_v49 = vmax.f32 %v3177_v56, %v1333_v40 }
 0x1c0   :  { %2798 = vst [vmem:[%s3729_s3 + $0x88] sm:$0xff] %v2740_v5   ;;  %v1771_v22 = vmax.f32 %v1667_v41, %v1719_v42 }
 0x1c1   :  { %v1746_v24 = vmax.f32 %v1642_v51, %v1694_v49 }
 0x1c2   :  { %v1827_v47 = vadd.f32 %v3428_v4, %v1771_v22  ;;  %v3796_v22 = vld [vmem:[#allocation14_spill] sm:$0xff] }
 0x1c3   :  { %v1802_v21 = vadd.f32 %v3428_v4, %v1746_v24 }
 0x1c4   :  { %v1879_v10 = vmax.f32 %v1827_v47, 0.0 }
 0x1c5   :  { %v1854_v52 = vmax.f32 %v1802_v21, 0.0  ;;  %v1463_v19 = vpop.f32.mrf.mxu2  ;;  %v1593_v55 = vpop.f32.mrf.mxu3 }
 0x1c6   :  { %v1668_v56 = vmax.f32 %v3179_v59, %v1463_v19  ;;  %v1720_v20 = vmax.f32 %v3181_v60, %v1593_v55  ;;  %v1206_v28 = vpop.f32.mrf.mxu0  ;;  %v1336_v32 = vpop.f32.mrf.mxu1  ;;  %v3798_v55 = vld [vmem:[#allocation12_spill] sm:$0xff] }
 0x1c7   :  { %v2680_v63 = vpack.c.bf16 %v1854_v52, %v1853_v50  ;;  %v1643_v25 = vmax.f32 %v3786_v11, %v1206_v28  ;;  %v1695_v12 = vmax.f32 %v3787_v26, %v1336_v32  ;;  %v3797_v52 = vld [vmem:[#allocation15_spill] sm:$0xff] }
 0x1c8   :  { %v1772_v48 = vmax.f32 %v1668_v56, %v1720_v20  ;;  %v3799_v20 = vld [vmem:[#allocation13_spill] sm:$0xff] }
 0x1c9   :  { %2786 = vst [vmem:[%s3729_s3 + $0x28] sm:$0xff] %v2680_v63   ;;  %v1747_v0 = vmax.f32 %v1643_v25, %v1695_v12 }
 0x1ca   :  { %v1828_v9 = vadd.f32 %v3428_v4, %v1772_v48 }
 0x1cb   :  { %v1803_v8 = vadd.f32 %v3428_v4, %v1747_v0 }
 0x1cc   :  { %v1880_v59 = vmax.f32 %v1828_v9, 0.0  ;;  %v3800_v9 = vld [vmem:[#allocation16_spill] sm:$0xff] }
 0x1cd   :  { %v1466_v60 = vpop.f32.mrf.mxu2  ;;  %v1596_v61 = vpop.f32.mrf.mxu3  ;;  %v1855_v35 = vmax.f32 %v1803_v8, 0.0 }
 0x1ce   :  { %v2745_v62 = vpack.c.bf16 %v1880_v59, %v1879_v10  ;;  %v1208_v45 = vpop.f32.mrf.mxu0  ;;  %v1338_v46 = vpop.f32.mrf.mxu1  ;;  %v1669_v13 = vmax.f32 %v3790_v54, %v1466_v60  ;;  %v1721_v7 = vmax.f32 %v3791_v14, %v1596_v61  ;;  %v3801_v59 = vld [vmem:[#allocation17_spill] sm:$0xff] }
 0x1cf   :  { %v1644_v30 = vmax.f32 %v3788_v29, %v1208_v45  ;;  %v1696_v53 = vmax.f32 %v3789_v39, %v1338_v46  ;;  %v3802_v29 = vld [vmem:[#allocation18_spill] sm:$0xff]  ;;  %v3803_v39 = vld [vmem:[#allocation19_spill] sm:$0xff] }
 0x1d0   :  { %2799 = vst [vmem:[%s3729_s3 + $0x90] sm:$0xff] %v2745_v62   ;;  %v1773_v2 = vmax.f32 %v1669_v13, %v1721_v7 }
 0x1d1   :  { %v1748_v27 = vmax.f32 %v1644_v30, %v1696_v53 }
 0x1d2   :  { %v1829_v57 = vadd.f32 %v3428_v4, %v1773_v2 }
 0x1d3   :  { %v1804_v1 = vadd.f32 %v3428_v4, %v1748_v27 }
 0x1d4   :  { %v1881_v40 = vmax.f32 %v1829_v57, 0.0 }
 0x1d5   :  { %v1856_v36 = vmax.f32 %v1804_v1, 0.0  ;;  %v1468_v31 = vpop.f32.mrf.mxu2  ;;  %v1598_v3 = vpop.f32.mrf.mxu3 }
 0x1d6   :  { %v1670_v17 = vmax.f32 %v3792_v15, %v1468_v31  ;;  %v1722_v34 = vmax.f32 %v3793_v33, %v1598_v3  ;;  %v1211_v18 = vpop.f32.mrf.mxu0  ;;  %v1341_v43 = vpop.f32.mrf.mxu1  ;;  %v3805_v3 = vld [vmem:[#allocation23_spill] sm:$0xff] }
 0x1d7   :  { %v2685_v44 = vpack.c.bf16 %v1856_v36, %v1855_v35  ;;  %v1645_v38 = vmax.f32 %v3794_v58, %v1211_v18  ;;  %v1697_v5 = vmax.f32 %v3795_v16, %v1341_v43  ;;  %v3804_v36 = vld [vmem:[#allocation22_spill] sm:$0xff] }
 0x1d8   :  { %v1774_v37 = vmax.f32 %v1670_v17, %v1722_v34  ;;  %v3806_v17 = vld [vmem:[#allocation20_spill] sm:$0xff]  ;;  %v3807_v34 = vld [vmem:[#allocation21_spill] sm:$0xff] }
 0x1d9   :  { %2787 = vst [vmem:[%s3729_s3 + $0x30] sm:$0xff] %v2685_v44   ;;  %v1749_v49 = vmax.f32 %v1645_v38, %v1697_v5 }
 0x1da   :  { %v1830_v6 = vadd.f32 %v3428_v4, %v1774_v37 }
 0x1db   :  { %v1805_v32 = vadd.f32 %v3428_v4, %v1749_v49 }
 0x1dc   :  { %v1882_v51 = vmax.f32 %v1830_v6, 0.0  ;;  %v3808_v6 = vld [vmem:[#allocation24_spill] sm:$0xff] }
 0x1dd   :  { %v1471_v41 = vpop.f32.mrf.mxu2  ;;  %v1601_v42 = vpop.f32.mrf.mxu3  ;;  %v1857_v11 = vmax.f32 %v1805_v32, 0.0 }
 0x1de   :  { %v2750_v23 = vpack.c.bf16 %v1882_v51, %v1881_v40  ;;  %v1213_v24 = vpop.f32.mrf.mxu0  ;;  %v1343_v21 = vpop.f32.mrf.mxu1  ;;  %v1671_v56 = vmax.f32 %v3798_v55, %v1471_v41  ;;  %v1723_v28 = vmax.f32 %v3799_v20, %v1601_v42  ;;  %v3809_v51 = vld [vmem:[#allocation25_spill] sm:$0xff] }
 0x1df   :  { %v1646_v50 = vmax.f32 %v3796_v22, %v1213_v24  ;;  %v1698_v19 = vmax.f32 %v3797_v52, %v1343_v21  ;;  %v3810_v22 = vld [vmem:[#allocation26_spill] sm:$0xff]  ;;  %v3811_v52 = vld [vmem:[#allocation27_spill] sm:$0xff] }
 0x1e0   :  { %2800 = vst [vmem:[%s3729_s3 + $0x98] sm:$0xff] %v2750_v23   ;;  %v1775_v48 = vmax.f32 %v1671_v56, %v1723_v28 }
 0x1e1   :  { %v1750_v63 = vmax.f32 %v1646_v50, %v1698_v19 }
 0x1e2   :  { %v1831_v45 = vadd.f32 %v3428_v4, %v1775_v48 }
 0x1e3   :  { %v1806_v47 = vadd.f32 %v3428_v4, %v1750_v63 }
 0x1e4   :  { %v1883_v13 = vmax.f32 %v1831_v45, 0.0 }
 0x1e5   :  { %v1858_v25 = vmax.f32 %v1806_v47, 0.0  ;;  %v1473_v26 = vpop.f32.mrf.mxu2  ;;  %v1603_v12 = vpop.f32.mrf.mxu3 }
 0x1e6   :  { %v1672_v10 = vmax.f32 %v3800_v9, %v1473_v26  ;;  %v1724_v0 = vmax.f32 %v3801_v59, %v1603_v12  ;;  %v1216_v60 = vpop.f32.mrf.mxu0  ;;  %v1346_v61 = vpop.f32.mrf.mxu1  ;;  %v3813_v12 = vld [vmem:[#allocation31_spill] sm:$0xff] }
 0x1e7   :  { %v2690_v62 = vpack.c.bf16 %v1858_v25, %v1857_v11  ;;  %v1647_v30 = vmax.f32 %v3802_v29, %v1216_v60  ;;  %v1699_v53 = vmax.f32 %v3803_v39, %v1346_v61  ;;  %v3812_v25 = vld [vmem:[#allocation30_spill] sm:$0xff] }
 0x1e8   :  { %v1776_v46 = vmax.f32 %v1672_v10, %v1724_v0  ;;  %v3814_v10 = vld [vmem:[#allocation28_spill] sm:$0xff]  ;;  %v3815_v0 = vld [vmem:[#allocation29_spill] sm:$0xff] }
 0x1e9   :  { %2788 = vst [vmem:[%s3729_s3 + $0x38] sm:$0xff] %v2690_v62   ;;  %v1751_v7 = vmax.f32 %v1647_v30, %v1699_v53 }
 0x1ea   :  { %v1832_v54 = vadd.f32 %v3428_v4, %v1776_v46 }
 0x1eb   :  { %v1807_v43 = vadd.f32 %v3428_v4, %v1751_v7 }
 0x1ec   :  { %v1884_v14 = vmax.f32 %v1832_v54, 0.0  ;;  %v3816_v54 = vld [vmem:[#allocation32_spill] sm:$0xff] }
 0x1ed   :  { %v1476_v8 = vpop.f32.mrf.mxu2  ;;  %v1606_v27 = vpop.f32.mrf.mxu3  ;;  %v1859_v58 = vmax.f32 %v1807_v43, 0.0 }
 0x1ee   :  { %v2755_v1 = vpack.c.bf16 %v1884_v14, %v1883_v13  ;;  %v1218_v2 = vpop.f32.mrf.mxu0  ;;  %v1348_v35 = vpop.f32.mrf.mxu1  ;;  %v1673_v33 = vmax.f32 %v3806_v17, %v1476_v8  ;;  %v1725_v18 = vmax.f32 %v3807_v34, %v1606_v27  ;;  %v3817_v14 = vld [vmem:[#allocation33_spill] sm:$0xff] }
 0x1ef   :  { %v1648_v31 = vmax.f32 %v3804_v36, %v1218_v2  ;;  %v1700_v15 = vmax.f32 %v3805_v3, %v1348_v35  ;;  %v3818_v36 = vld [vmem:[#allocation34_spill] sm:$0xff]  ;;  %v3819_v3 = vld [vmem:[#allocation35_spill] sm:$0xff] }
 0x1f0   :  { %2801 = vst [vmem:[%s3729_s3 + $0xa0] sm:$0xff] %v2755_v1   ;;  %v1777_v37 = vmax.f32 %v1673_v33, %v1725_v18 }
 0x1f1   :  { %v1752_v44 = vmax.f32 %v1648_v31, %v1700_v15 }
 0x1f2   :  { %v1833_v24 = vadd.f32 %v3428_v4, %v1777_v37 }
 0x1f3   :  { %v1808_v57 = vadd.f32 %v3428_v4, %v1752_v44 }
 0x1f4   :  { %v1885_v56 = vmax.f32 %v1833_v24, 0.0 }
 0x1f5   :  { %v1860_v38 = vmax.f32 %v1808_v57, 0.0  ;;  %v1478_v16 = vpop.f32.mrf.mxu2  ;;  %v1608_v5 = vpop.f32.mrf.mxu3 }
 0x1f6   :  { %v1674_v40 = vmax.f32 %v3808_v6, %v1478_v16  ;;  %v1726_v49 = vmax.f32 %v3809_v51, %v1608_v5  ;;  %v1221_v41 = vpop.f32.mrf.mxu0  ;;  %v1351_v42 = vpop.f32.mrf.mxu1  ;;  %v3821_v5 = vld [vmem:[#allocation39_spill] sm:$0xff] }
 0x1f7   :  { %v2695_v23 = vpack.c.bf16 %v1860_v38, %v1859_v58  ;;  %v1649_v50 = vmax.f32 %v3810_v22, %v1221_v41  ;;  %v1701_v19 = vmax.f32 %v3811_v52, %v1351_v42  ;;  %v3820_v38 = vld [vmem:[#allocation38_spill] sm:$0xff] }
 0x1f8   :  { %v1778_v21 = vmax.f32 %v1674_v40, %v1726_v49  ;;  %v3822_v40 = vld [vmem:[#allocation36_spill] sm:$0xff]  ;;  %v3823_v49 = vld [vmem:[#allocation37_spill] sm:$0xff] }
 0x1f9   :  { %2789 = vst [vmem:[%s3729_s3 + $0x40] sm:$0xff] %v2695_v23   ;;  %v1753_v28 = vmax.f32 %v1649_v50, %v1701_v19 }
 0x1fa   :  { %v1834_v55 = vadd.f32 %v3428_v4, %v1778_v21 }
 0x1fb   :  { %v1809_v61 = vadd.f32 %v3428_v4, %v1753_v28 }
 0x1fc   :  { %v1886_v20 = vmax.f32 %v1834_v55, 0.0  ;;  %v3824_v55 = vld [vmem:[#allocation40_spill] sm:$0xff] }
 0x1fd   :  { %v1481_v32 = vpop.f32.mrf.mxu2  ;;  %v1611_v63 = vpop.f32.mrf.mxu3  ;;  %v1861_v29 = vmax.f32 %v1809_v61, 0.0 }
 0x1fe   :  { %v2760_v47 = vpack.c.bf16 %v1886_v20, %v1885_v56  ;;  %v1223_v48 = vpop.f32.mrf.mxu0  ;;  %v1353_v11 = vpop.f32.mrf.mxu1  ;;  %v1675_v59 = vmax.f32 %v3814_v10, %v1481_v32  ;;  %v1727_v60 = vmax.f32 %v3815_v0, %v1611_v63  ;;  %v3825_v20 = vld [vmem:[#allocation41_spill] sm:$0xff] }
 0x1ff   :  { %v1650_v26 = vmax.f32 %v3812_v25, %v1223_v48  ;;  %v1702_v9 = vmax.f32 %v3813_v12, %v1353_v11  ;;  %v3826_v25 = vld [vmem:[#allocation42_spill] sm:$0xff]  ;;  %v3827_v12 = vld [vmem:[#allocation43_spill] sm:$0xff] }
 0x200   :  { %2802 = vst [vmem:[%s3729_s3 + $0xa8] sm:$0xff] %v2760_v47   ;;  %v1779_v46 = vmax.f32 %v1675_v59, %v1727_v60 }
 0x201   :  { %v1754_v62 = vmax.f32 %v1650_v26, %v1702_v9 }
 0x202   :  { %v1835_v2 = vadd.f32 %v3428_v4, %v1779_v46 }
 0x203   :  { %v1810_v45 = vadd.f32 %v3428_v4, %v1754_v62 }
 0x204   :  { %v1887_v33 = vmax.f32 %v1835_v2, 0.0 }
 0x205   :  { %v1862_v30 = vmax.f32 %v1810_v45, 0.0  ;;  %v1483_v39 = vpop.f32.mrf.mxu2  ;;  %v1613_v53 = vpop.f32.mrf.mxu3 }
 0x206   :  { %v1676_v13 = vmax.f32 %v3816_v54, %v1483_v39  ;;  %v1728_v7 = vmax.f32 %v3817_v14, %v1613_v53  ;;  %v1226_v8 = vpop.f32.mrf.mxu0  ;;  %v1356_v27 = vpop.f32.mrf.mxu1  ;;  %v3829_v53 = vld [vmem:[#allocation47_spill] sm:$0xff] }
 0x207   :  { %v2700_v1 = vpack.c.bf16 %v1862_v30, %v1861_v29  ;;  %v1651_v31 = vmax.f32 %v3818_v36, %v1226_v8  ;;  %v1703_v15 = vmax.f32 %v3819_v3, %v1356_v27  ;;  %v3828_v30 = vld [vmem:[#allocation46_spill] sm:$0xff] }
 0x208   :  { %v1780_v35 = vmax.f32 %v1676_v13, %v1728_v7  ;;  %v3830_v13 = vld [vmem:[#allocation44_spill] sm:$0xff]  ;;  %v3831_v7 = vld [vmem:[#allocation45_spill] sm:$0xff] }
 0x209   :  { %2790 = vst [vmem:[%s3729_s3 + $0x48] sm:$0xff] %v2700_v1   ;;  %v1755_v18 = vmax.f32 %v1651_v31, %v1703_v15 }
 0x20a   :  { %v1836_v17 = vadd.f32 %v3428_v4, %v1780_v35 }
 0x20b   :  { %v1811_v42 = vadd.f32 %v3428_v4, %v1755_v18 }
 0x20c   :  { %v1888_v34 = vmax.f32 %v1836_v17, 0.0  ;;  %v3832_v17 = vld [vmem:[#allocation48_spill] sm:$0xff] }
 0x20d   :  { %v1486_v43 = vpop.f32.mrf.mxu2  ;;  %v1616_v44 = vpop.f32.mrf.mxu3  ;;  %v1863_v22 = vmax.f32 %v1811_v42, 0.0 }
 0x20e   :  { %v2765_v57 = vpack.c.bf16 %v1888_v34, %v1887_v33  ;;  %v1228_v37 = vpop.f32.mrf.mxu0  ;;  %v1358_v58 = vpop.f32.mrf.mxu1  ;;  %v1677_v51 = vmax.f32 %v3822_v40, %v1486_v43  ;;  %v1729_v41 = vmax.f32 %v3823_v49, %v1616_v44  ;;  %v3833_v34 = vld [vmem:[#allocation49_spill] sm:$0xff] }
 0x20f   :  { %v1652_v16 = vmax.f32 %v3820_v38, %v1228_v37  ;;  %v1704_v6 = vmax.f32 %v3821_v5, %v1358_v58  ;;  %v3834_v38 = vld [vmem:[#allocation50_spill] sm:$0xff]  ;;  %v3835_v5 = vld [vmem:[#allocation51_spill] sm:$0xff] }
 0x210   :  { %2803 = vst [vmem:[%s3729_s3 + $0xb0] sm:$0xff] %v2765_v57   ;;  %v1781_v21 = vmax.f32 %v1677_v51, %v1729_v41 }
 0x211   :  { %v1756_v23 = vmax.f32 %v1652_v16, %v1704_v6 }
 0x212   :  { %v1837_v48 = vadd.f32 %v3428_v4, %v1781_v21 }
 0x213   :  { %v1812_v24 = vadd.f32 %v3428_v4, %v1756_v23 }
 0x214   :  { %v1889_v59 = vmax.f32 %v1837_v48, 0.0 }
 0x215   :  { %v1864_v50 = vmax.f32 %v1812_v24, 0.0  ;;  %v1488_v52 = vpop.f32.mrf.mxu2  ;;  %v1618_v19 = vpop.f32.mrf.mxu3 }
 0x216   :  { %v1678_v56 = vmax.f32 %v3824_v55, %v1488_v52  ;;  %v1730_v28 = vmax.f32 %v3825_v20, %v1618_v19  ;;  %v1231_v32 = vpop.f32.mrf.mxu0  ;;  %v1361_v63 = vpop.f32.mrf.mxu1  ;;  %v3837_v19 = vld [vmem:[#allocation55_spill] sm:$0xff] }
 0x217   :  { %v2705_v47 = vpack.c.bf16 %v1864_v50, %v1863_v22  ;;  %v1653_v26 = vmax.f32 %v3826_v25, %v1231_v32  ;;  %v1705_v9 = vmax.f32 %v3827_v12, %v1361_v63  ;;  %v3836_v50 = vld [vmem:[#allocation54_spill] sm:$0xff] }
 0x218   :  { %v1782_v11 = vmax.f32 %v1678_v56, %v1730_v28  ;;  %v3838_v56 = vld [vmem:[#allocation52_spill] sm:$0xff]  ;;  %v3839_v28 = vld [vmem:[#allocation53_spill] sm:$0xff] }
 0x219   :  { %2791 = vst [vmem:[%s3729_s3 + $0x50] sm:$0xff] %v2705_v47   ;;  %v1757_v60 = vmax.f32 %v1653_v26, %v1705_v9 }
 0x21a   :  { %v1838_v10 = vadd.f32 %v3428_v4, %v1782_v11 }
 0x21b   :  { %v1813_v27 = vadd.f32 %v3428_v4, %v1757_v60 }
 0x21c   :  { %v1890_v0 = vmax.f32 %v1838_v10, 0.0  ;;  %v3840_v10 = vld [vmem:[#allocation56_spill] sm:$0xff] }
 0x21d   :  { %v1491_v61 = vpop.f32.mrf.mxu2  ;;  %v1621_v62 = vpop.f32.mrf.mxu3  ;;  %v1865_v36 = vmax.f32 %v1813_v27, 0.0 }
 0x21e   :  { %v2770_v45 = vpack.c.bf16 %v1890_v0, %v1889_v59  ;;  %v1233_v46 = vpop.f32.mrf.mxu0  ;;  %v1363_v29 = vpop.f32.mrf.mxu1  ;;  %v1679_v14 = vmax.f32 %v3830_v13, %v1491_v61  ;;  %v1731_v8 = vmax.f32 %v3831_v7, %v1621_v62  ;;  %v3841_v0 = vld [vmem:[#allocation57_spill] sm:$0xff] }
 0x21f   :  { %v1654_v39 = vmax.f32 %v3828_v30, %v1233_v46  ;;  %v1706_v54 = vmax.f32 %v3829_v53, %v1363_v29 }
 0x220   :  { %2804 = vst [vmem:[%s3729_s3 + $0xb8] sm:$0xff] %v2770_v45   ;;  %v1783_v35 = vmax.f32 %v1679_v14, %v1731_v8 }
 0x221   :  { %v1758_v1 = vmax.f32 %v1654_v39, %v1706_v54 }
 0x222   :  { %v1839_v37 = vadd.f32 %v3428_v4, %v1783_v35 }
 0x223   :  { %v1814_v2 = vadd.f32 %v3428_v4, %v1758_v1 }
 0x224   :  { %v1891_v51 = vmax.f32 %v1839_v37, 0.0 }
 0x225   :  { %v1866_v31 = vmax.f32 %v1814_v2, 0.0  ;;  %v1493_v3 = vpop.f32.mrf.mxu2  ;;  %v1623_v15 = vpop.f32.mrf.mxu3 }
 0x226   :  { %v1680_v33 = vmax.f32 %v3832_v17, %v1493_v3  ;;  %v1732_v18 = vmax.f32 %v3833_v34, %v1623_v15  ;;  %v1236_v43 = vpop.f32.mrf.mxu0  ;;  %v1366_v44 = vpop.f32.mrf.mxu1 }
 0x227   :  { %v2710_v57 = vpack.c.bf16 %v1866_v31, %v1865_v36  ;;  %v1655_v16 = vmax.f32 %v3834_v38, %v1236_v43  ;;  %v1707_v6 = vmax.f32 %v3835_v5, %v1366_v44 }
 0x228   :  { %v1784_v58 = vmax.f32 %v1680_v33, %v1732_v18 }
 0x229   :  { %2792 = vst [vmem:[%s3729_s3 + $0x58] sm:$0xff] %v2710_v57   ;;  %v1759_v41 = vmax.f32 %v1655_v16, %v1707_v6 }
 0x22a   :  { %v1840_v40 = vadd.f32 %v3428_v4, %v1784_v58 }
 0x22b   :  { %v1815_v63 = vadd.f32 %v3428_v4, %v1759_v41 }
 0x22c   :  { %v1892_v49 = vmax.f32 %v1840_v40, 0.0 }
 0x22d   :  { %v1496_v42 = vpop.f32.mrf.mxu2  ;;  %v1626_v23 = vpop.f32.mrf.mxu3  ;;  %v1867_v25 = vmax.f32 %v1815_v63, 0.0 }
 0x22e   :  { %v2775_v24 = vpack.c.bf16 %v1892_v49, %v1891_v51  ;;  %v1238_v21 = vpop.f32.mrf.mxu0  ;;  %v1368_v22 = vpop.f32.mrf.mxu1  ;;  %v1681_v20 = vmax.f32 %v3838_v56, %v1496_v42  ;;  %v1733_v32 = vmax.f32 %v3839_v28, %v1626_v23 }
 0x22f   :  { %v1656_v52 = vmax.f32 %v3836_v50, %v1238_v21  ;;  %v1708_v55 = vmax.f32 %v3837_v19, %v1368_v22 }
 0x230   :  { %2805 = vst [vmem:[%s3729_s3 + $0xc0] sm:$0xff] %v2775_v24   ;;  %v1785_v11 = vmax.f32 %v1681_v20, %v1733_v32 }
 0x231   :  { %v1760_v47 = vmax.f32 %v1656_v52, %v1708_v55 }
 0x232   :  { %v1841_v62 = vadd.f32 %v3428_v4, %v1785_v11 }
 0x233   :  { %v1816_v48 = vadd.f32 %v3428_v4, %v1760_v47 }
 0x234   :  { %v1893_v29 = vmax.f32 %v1841_v62, 0.0 }
 0x235   :  { %v1868_v26 = vmax.f32 %v1816_v48, 0.0  ;;  %v1498_v12 = vpop.f32.mrf.mxu2  ;;  %v1628_v9 = vpop.f32.mrf.mxu3 }
 0x236   :  { %v1682_v59 = vmax.f32 %v3840_v10, %v1498_v12  ;;  %v1734_v60 = vmax.f32 %v3841_v0, %v1628_v9 }
 0x237   :  { %v2715_v61 = vpack.c.bf16 %v1868_v26, %v1867_v25 }
 0x238   :  { %v1786_v45 = vmax.f32 %v1682_v59, %v1734_v60 }
 0x239   :  { %2793 = vst [vmem:[%s3729_s3 + $0x60] sm:$0xff] %v2715_v61  }
 0x23a   :  { %v1842_v46 = vadd.f32 %v3428_v4, %v1786_v45 }
 0x23c   :  { %v1894_v30 = vmax.f32 %v1842_v46, 0.0 }
 0x23e   :  { %v2780_v39 = vpack.c.bf16 %v1894_v30, %v1893_v29 }
 0x240   :  { %2806 = vst [vmem:[%s3729_s3 + $0xc8] sm:$0xff] %v2780_v39  }

// kernel: net_forward.4
= control target key start
LH: loop header
LB: loop body
LE: loop exit
PB: predicated region body
PF: predicated region fallthrough
CT: control target
= control target key end

     0   :  { %vm316_vm0 = vcmask 1042432   ;;  %vm267_vm1 = vcmask 179200   ;;  %s1147_s1 = inlined_call_operand.vmem [shape: bf16[150,128], index: 1, kind: input, shape index: {}]   ;;  %s1148_s0 = inlined_call_operand.vmem [shape: bf16[2,4,32,150], index: 0, kind: input, shape index: {}]   ;;  %s1149_s2 = inlined_call_operand.vmem [shape: f32[1,128], index: 2, kind: input, shape index: {}]   ;;  %s1150_s3 = inlined_call_operand.vmem [shape: bf16[2,32,128], index: 3, kind: output, shape index: {}]  }
   0x1   :  { %v781_v0 = vld [vmem:[%s1147_s1 + $0x38] sm:$0xff]  ;;  %v65_v1 = vld [vmem:[%s1147_s1 + $0x48] sm:$0x7]  ;;  %v780_v3 = vld [vmem:[%s1147_s1 + $0x30] sm:$0xff] }
   0x2   :  { %v247_v2 = vunpack.c.l.b16 %v65_v1  ;;  %320 = vmatpush.bf16.msra.mxu0 %v781_v0  ;;  %806 = vmatpush.bf16.msra.mxu2 %v781_v0  ;;  %v782_v6 = vld [vmem:[%s1147_s1 + $0x40] sm:$0xff]  ;;  %v779_v7 = vld [vmem:[%s1147_s1 + $0x28] sm:$0xff]  ;;  %v760_v10 = vld [vmem:[%s1148_s0 + $0x94] sm:$0xf] }
   0x3   :  { %v742_v8 = vld [vmem:[%s1148_s0 + $0x4] sm:$0xf]  ;;  %v566_v9 = vld [vmem:[%s1148_s0 + $0x8] sm:$0xf0]  ;;  %v638_v11 = vld [vmem:[%s1148_s0 + $0x98] sm:$0xf0] }
   0x4   :  { %v257_v4 = vpack.c.b16 %v247_v2, %v247_v2  ;;  %v569_v12 = vor.u32 %v742_v8, %v566_v9  ;;  %v778_v13 = vld [vmem:[%s1147_s1 + $0x20] sm:$0xff]  ;;  %v641_v14 = vor.u32 %v760_v10, %v638_v11  ;;  %v777_v15 = vld [vmem:[%s1147_s1 + $0x18] sm:$0xff]  ;;  %v776_v16 = vld [vmem:[%s1147_s1 + $0x10] sm:$0xff] }
   0x5   :  { %v775_v17 = vld [vmem:[%s1147_s1 + $0x8] sm:$0xff]  ;;  %v744_v18 = vld [vmem:[%s1148_s0 + $0x14] sm:$0xf]  ;;  %v574_v19 = vld [vmem:[%s1148_s0 + $0x18] sm:$0xf0] }
   0x6   :  { %v318_v5 = vsel %vm316_vm0, %v257_v4, 0  ;;  %321 = vmatpush.bf16.msra.mxu0 %v780_v3  ;;  %807 = vmatpush.bf16.msra.mxu2 %v780_v3  ;;  %v762_v20 = vld [vmem:[%s1148_s0 + $0xa4] sm:$0xf]  ;;  %v646_v21 = vld [vmem:[%s1148_s0 + $0xa8] sm:$0xf0]  ;;  %v577_v22 = vor.u32 %v744_v18, %v574_v19 }
   0x7   :  { %415 = vmatpush.bf16.msra.mxu1 %v318_v5  ;;  %814 = vmatpush.bf16.msra.mxu3 %v318_v5  ;;  %v774_v23 = vld [vmem:[%s1147_s1] sm:$0xff]  ;;  %v743_v25 = vld [vmem:[%s1148_s0 + $0x4] sm:$0xf0]  ;;  %v649_v26 = vor.u32 %v762_v20, %v646_v21  ;;  %v582_v32 = vld [vmem:[%s1148_s0 + $0x28] sm:$0xf0] }
   0x8   :  { %v564_v24 = vld [vmem:[%s1148_s0] sm:$0xf]  ;;  %v759_v28 = vld [vmem:[%s1148_s0 + $0x84] sm:$0xf0]  ;;  %v746_v31 = vld [vmem:[%s1148_s0 + $0x24] sm:$0xf] }
   0x9   :  { %v628_v27 = vld [vmem:[%s1148_s0 + $0x80] sm:$0xf]  ;;  %v565_v29 = vor.u32 %v743_v25, %v564_v24  ;;  %v764_v33 = vld [vmem:[%s1148_s0 + $0xb4] sm:$0xf]  ;;  %v654_v34 = vld [vmem:[%s1148_s0 + $0xb8] sm:$0xf0]  ;;  %v585_v35 = vor.u32 %v746_v31, %v582_v32 }
   0xa   :  { %322 = vmatpush.bf16.msra.mxu0 %v779_v7  ;;  %808 = vmatpush.bf16.msra.mxu2 %v779_v7  ;;  %v629_v30 = vor.u32 %v759_v28, %v628_v27  ;;  %v572_v36 = vld [vmem:[%s1148_s0 + $0x10] sm:$0xf]  ;;  %v745_v37 = vld [vmem:[%s1148_s0 + $0x14] sm:$0xf0]  ;;  %v657_v38 = vor.u32 %v764_v33, %v654_v34  ;;  %v748_v43 = vld [vmem:[%s1148_s0 + $0x34] sm:$0xf] }
   0xb   :  { %416 = vmatpush.bf16.msra.mxu1 %v782_v6  ;;  %815 = vmatpush.bf16.msra.mxu3 %v782_v6  ;;  %v636_v39 = vld [vmem:[%s1148_s0 + $0x90] sm:$0xf]  ;;  %v761_v40 = vld [vmem:[%s1148_s0 + $0x94] sm:$0xf0]  ;;  %v573_v41 = vor.u32 %v745_v37, %v572_v36  ;;  %v590_v44 = vld [vmem:[%s1148_s0 + $0x38] sm:$0xf0] }
   0xc   :  { %v637_v42 = vor.u32 %v761_v40, %v636_v39  ;;  %v766_v45 = vld [vmem:[%s1148_s0 + $0xc4] sm:$0xf]  ;;  %v662_v46 = vld [vmem:[%s1148_s0 + $0xc8] sm:$0xf0]  ;;  %v593_v47 = vor.u32 %v748_v43, %v590_v44  ;;  %v580_v48 = vld [vmem:[%s1148_s0 + $0x20] sm:$0xf] }
   0xd   :  { %v747_v49 = vld [vmem:[%s1148_s0 + $0x24] sm:$0xf0]  ;;  %v665_v50 = vor.u32 %v766_v45, %v662_v46  ;;  %v644_v51 = vld [vmem:[%s1148_s0 + $0xa0] sm:$0xf]  ;;  %v750_v55 = vld [vmem:[%s1148_s0 + $0x44] sm:$0xf] }
   0xe   :  { %726 = vmatmul.msk.bf16.vlgmr.msra.gmra.mxu1 %vm267_vm1, %v569_v12  ;;  %323 = vmatpush.bf16.msra.mxu0 %v778_v13  ;;  %v763_v52 = vld [vmem:[%s1148_s0 + $0xa4] sm:$0xf0]  ;;  %v581_v53 = vor.u32 %v747_v49, %v580_v48  ;;  %v598_v56 = vld [vmem:[%s1148_s0 + $0x48] sm:$0xf0]  ;;  %v768_v57 = vld [vmem:[%s1148_s0 + $0xd4] sm:$0xf] }
   0xf   :  { %735 = vmatmul.msk.bf16.vlgmr.msra.gmra.mxu3 %vm267_vm1, %v641_v14  ;;  %809 = vmatpush.bf16.msra.mxu2 %v778_v13  ;;  %v645_v54 = vor.u32 %v763_v52, %v644_v51  ;;  %v670_v58 = vld [vmem:[%s1148_s0 + $0xd8] sm:$0xf0]  ;;  %v601_v59 = vor.u32 %v750_v55, %v598_v56  ;;  %v588_v60 = vld [vmem:[%s1148_s0 + $0x30] sm:$0xf]  ;;  %v749_v61 = vld [vmem:[%s1148_s0 + $0x34] sm:$0xf0] }
  0x10   :  { %v673_v62 = vor.u32 %v768_v57, %v670_v58  ;;  %v652_v63 = vld [vmem:[%s1148_s0 + $0xb0] sm:$0xf]  ;;  %v765_v0 = vld [vmem:[%s1148_s0 + $0xb4] sm:$0xf0]  ;;  %v589_v1 = vor.u32 %v749_v61, %v588_v60  ;;  %v752_v3 = vld [vmem:[%s1148_s0 + $0x54] sm:$0xf] }
  0x11   :  { %v653_v2 = vor.u32 %v765_v0, %v652_v63  ;;  %v606_v4 = vld [vmem:[%s1148_s0 + $0x58] sm:$0xf0]  ;;  %v770_v5 = vld [vmem:[%s1148_s0 + $0xe4] sm:$0xf]  ;;  %v678_v6 = vld [vmem:[%s1148_s0 + $0xe8] sm:$0xf0] }
  0x12   :  { %324 = vmatpush.bf16.msra.mxu0 %v777_v15  ;;  %v609_v7 = vor.u32 %v752_v3, %v606_v4  ;;  %v596_v8 = vld [vmem:[%s1148_s0 + $0x40] sm:$0xf]  ;;  %v751_v9 = vld [vmem:[%s1148_s0 + $0x44] sm:$0xf0]  ;;  %v681_v10 = vor.u32 %v770_v5, %v678_v6  ;;  %v686_v18 = vld [vmem:[%s1148_s0 + $0xf8] sm:$0xf0] }
  0x13   :  { %810 = vmatpush.bf16.msra.mxu2 %v777_v15  ;;  %v660_v11 = vld [vmem:[%s1148_s0 + $0xc0] sm:$0xf]  ;;  %v767_v12 = vld [vmem:[%s1148_s0 + $0xc4] sm:$0xf0]  ;;  %v597_v13 = vor.u32 %v751_v9, %v596_v8  ;;  %v754_v15 = vld [vmem:[%s1148_s0 + $0x64] sm:$0xf] }
  0x14   :  { %v661_v14 = vor.u32 %v767_v12, %v660_v11  ;;  %v604_v20 = vld [vmem:[%s1148_s0 + $0x50] sm:$0xf]  ;;  %v753_v21 = vld [vmem:[%s1148_s0 + $0x54] sm:$0xf0]  ;;  %v756_v27 = vld [vmem:[%s1148_s0 + $0x74] sm:$0xf] }
  0x15   :  { %v769_v24 = vld [vmem:[%s1148_s0 + $0xd4] sm:$0xf0]  ;;  %v605_v25 = vor.u32 %v753_v21, %v604_v20  ;;  %v622_v28 = vld [vmem:[%s1148_s0 + $0x78] sm:$0xf0]  ;;  %v755_v31 = vld [vmem:[%s1148_s0 + $0x64] sm:$0xf0] }
  0x16   :  { %325 = vmatpush.bf16.msra.mxu0 %v776_v16  ;;  %v676_v32 = vld [vmem:[%s1148_s0 + $0xe0] sm:$0xf]  ;;  %v771_v33 = vld [vmem:[%s1148_s0 + $0xe4] sm:$0xf0]  ;;  %v758_v36 = vld [vmem:[%s1148_s0 + $0x84] sm:$0xf] }
  0x17   :  { %811 = vmatpush.bf16.msra.mxu2 %v776_v16  ;;  %v614_v16 = vld [vmem:[%s1148_s0 + $0x68] sm:$0xf0]  ;;  %v620_v40 = vld [vmem:[%s1148_s0 + $0x70] sm:$0xf]  ;;  %v773_v43 = vld [vmem:[%s1148_s0 + $0xf4] sm:$0xf0] }
  0x18   :  { %v617_v19 = vor.u32 %v754_v15, %v614_v16  ;;  %v630_v37 = vld [vmem:[%s1148_s0 + $0x88] sm:$0xf0] }
  0x1a   :  { %326 = vmatpush.bf16.msra.mxu0 %v775_v17 }
  0x1b   :  { %812 = vmatpush.bf16.msra.mxu2 %v775_v17  ;;  %v772_v17 = vld [vmem:[%s1148_s0 + $0xf4] sm:$0xf] }
  0x1e   :  { %727 = vmatmul.msk.bf16.gmra.mxu1 %vm267_vm1, %v577_v22  ;;  %327 = vmatpush.bf16.msra.mxu0 %v774_v23  ;;  %v689_v22 = vor.u32 %v772_v17, %v686_v18 }
  0x1f   :  { %736 = vmatmul.msk.bf16.gmra.mxu3 %vm267_vm1, %v649_v26  ;;  %813 = vmatpush.bf16.msra.mxu2 %v774_v23  ;;  %v668_v23 = vld [vmem:[%s1148_s0 + $0xd0] sm:$0xf] }
  0x20   :  { %v669_v26 = vor.u32 %v769_v24, %v668_v23 }
  0x21   :  { %328 = vmatmul.bf16.vlgmr.msra.gmra.mxu0 %v565_v29  ;;  %v625_v29 = vor.u32 %v756_v27, %v622_v28 }
  0x22   :  { %368 = vmatmul.bf16.vlgmr.msra.gmra.mxu2 %v629_v30  ;;  %v612_v30 = vld [vmem:[%s1148_s0 + $0x60] sm:$0xf] }
  0x23   :  { %v613_v34 = vor.u32 %v755_v31, %v612_v30 }
  0x2e   :  { %728 = vmatmul.msk.bf16.gmra.mxu1 %vm267_vm1, %v585_v35  ;;  %v677_v35 = vor.u32 %v771_v33, %v676_v32 }
  0x2f   :  { %737 = vmatmul.msk.bf16.gmra.mxu3 %vm267_vm1, %v657_v38  ;;  %v633_v38 = vor.u32 %v758_v36, %v630_v37 }
  0x31   :  { %333 = vmatmul.bf16.gmra.mxu0 %v573_v41  ;;  %v757_v41 = vld [vmem:[%s1148_s0 + $0x74] sm:$0xf0] }
  0x32   :  { %373 = vmatmul.bf16.gmra.mxu2 %v637_v42  ;;  %v684_v42 = vld [vmem:[%s1148_s0 + $0xf0] sm:$0xf]  ;;  %v621_v44 = vor.u32 %v757_v41, %v620_v40 }
  0x33   :  { %v685_v45 = vor.u32 %v773_v43, %v684_v42 }
  0x3e   :  { %729 = vmatmul.msk.bf16.gmra.mxu1 %vm267_vm1, %v593_v47 }
  0x3f   :  { %738 = vmatmul.msk.bf16.gmra.mxu3 %vm267_vm1, %v665_v50 }
  0x41   :  { %338 = vmatmul.bf16.gmra.mxu0 %v581_v53 }
  0x42   :  { %378 = vmatmul.bf16.gmra.mxu2 %v645_v54 }
  0x4e   :  { %730 = vmatmul.msk.bf16.gmra.mxu1 %vm267_vm1, %v601_v59 }
  0x4f   :  { %739 = vmatmul.msk.bf16.gmra.mxu3 %vm267_vm1, %v673_v62 }
  0x51   :  { %343 = vmatmul.bf16.gmra.mxu0 %v589_v1 }
  0x52   :  { %383 = vmatmul.bf16.gmra.mxu2 %v653_v2 }
  0x5e   :  { %731 = vmatmul.msk.bf16.gmra.mxu1 %vm267_vm1, %v609_v7 }
  0x5f   :  { %740 = vmatmul.msk.bf16.gmra.mxu3 %vm267_vm1, %v681_v10 }
  0x61   :  { %348 = vmatmul.bf16.gmra.mxu0 %v597_v13 }
  0x62   :  { %388 = vmatmul.bf16.gmra.mxu2 %v661_v14 }
  0x6e   :  { %732 = vmatmul.msk.bf16.gmra.mxu1 %vm267_vm1, %v617_v19 }
  0x6f   :  { %741 = vmatmul.msk.bf16.gmra.mxu3 %vm267_vm1, %v689_v22 }
  0x71   :  { %353 = vmatmul.bf16.gmra.mxu0 %v605_v25 }
  0x72   :  { %393 = vmatmul.bf16.gmra.mxu2 %v669_v26 }
  0x7e   :  { %733 = vmatmul.msk.bf16.gmra.mxu1 %vm267_vm1, %v625_v29 }
  0x81   :  { %358 = vmatmul.bf16.gmra.mxu0 %v613_v34 }
  0x82   :  { %398 = vmatmul.bf16.gmra.mxu2 %v677_v35 }
  0x8b   :  { %v418_v39 = vpop.f32.mrf.mxu1 }
  0x8e   :  { %734 = vmatmul.msk.bf16.gmra.mxu1 %vm267_vm1, %v633_v38 }
  0x91   :  { %363 = vmatmul.bf16.gmra.mxu0 %v621_v44 }
  0x92   :  { %403 = vmatmul.bf16.gmra.mxu2 %v685_v45  ;;  %v463_v48 = vpop.f32.mrf.mxu3 }
  0x93   :  { %v420_v46 = vpop.f32.mrf.mxu1 }
  0x9a   :  { %v465_v53 = vpop.f32.mrf.mxu3 }
  0x9b   :  { %v423_v47 = vpop.f32.mrf.mxu1 }
  0x9e   :  { %v329_v49 = vpop.f32.mrf.mxu0 }
  0x9f   :  { %v1075_v50 = vadd.f32 %v418_v39, %v329_v49 }
  0xa2   :  { %v468_v60 = vpop.f32.mrf.mxu3 }
  0xa3   :  { %v425_v51 = vpop.f32.mrf.mxu1 }
  0xa5   :  { %v1077_v52 = vpop.f32.mrf.mxu2 }
  0xa6   :  { %v331_v54 = vpop.f32.mrf.mxu0 }
  0xa7   :  { %v1079_v55 = vadd.f32 %v420_v46, %v331_v54 }
  0xaa   :  { %v470_v2 = vpop.f32.mrf.mxu3 }
  0xab   :  { %v428_v56 = vpop.f32.mrf.mxu1 }
  0xad   :  { %v1081_v57 = vpop.f32.mrf.mxu2 }
  0xae   :  { %v334_v58 = vpop.f32.mrf.mxu0 }
  0xaf   :  { %v1083_v59 = vadd.f32 %v423_v47, %v334_v58 }
  0xb2   :  { %v473_v10 = vpop.f32.mrf.mxu3 }
  0xb3   :  { %v430_v61 = vpop.f32.mrf.mxu1 }
  0xb5   :  { %v374_v62 = vpop.f32.mrf.mxu2 }
  0xb6   :  { %v1085_v63 = vadd.f32 %v463_v48, %v374_v62  ;;  %v336_v0 = vpop.f32.mrf.mxu0 }
  0xb7   :  { %v1087_v1 = vadd.f32 %v425_v51, %v336_v0  ;;  %v816_v0 = vld [vmem:[%s1149_s2] ss:$0 sm:$0xff] }
  0xba   :  { %v475_v18 = vpop.f32.mrf.mxu3 }
  0xbb   :  { %v433_v3 = vpop.f32.mrf.mxu1 }
  0xbd   :  { %v376_v4 = vpop.f32.mrf.mxu2 }
  0xbe   :  { %v1089_v5 = vadd.f32 %v465_v53, %v376_v4  ;;  %v339_v6 = vpop.f32.mrf.mxu0 }
  0xbf   :  { %v429_v7 = vadd.f32 %v428_v56, %v339_v6 }
  0xc1   :  { %v498_v8 = vmax.f32 %v1075_v50, %v429_v7 }
  0xc2   :  { %v478_v28 = vpop.f32.mrf.mxu3 }
  0xc3   :  { %v435_v9 = vpop.f32.mrf.mxu1 }
  0xc5   :  { %v379_v11 = vpop.f32.mrf.mxu2 }
  0xc6   :  { %v1092_v12 = vadd.f32 %v468_v60, %v379_v11  ;;  %v341_v13 = vpop.f32.mrf.mxu0 }
  0xc7   :  { %v431_v14 = vadd.f32 %v430_v61, %v341_v13 }
  0xc9   :  { %v499_v15 = vmax.f32 %v1079_v55, %v431_v14 }
  0xca   :  { %v480_v36 = vpop.f32.mrf.mxu3 }
  0xcb   :  { %v438_v16 = vpop.f32.mrf.mxu1 }
  0xcd   :  { %v381_v17 = vpop.f32.mrf.mxu2 }
  0xce   :  { %v1095_v19 = vadd.f32 %v470_v2, %v381_v17  ;;  %v344_v20 = vpop.f32.mrf.mxu0 }
  0xcf   :  { %v1097_v21 = vadd.f32 %v433_v3, %v344_v20 }
  0xd1   :  { %v500_v22 = vmax.f32 %v1083_v59, %v1097_v21 }
  0xd2   :  { %v483_v41 = vpop.f32.mrf.mxu3 }
  0xd3   :  { %v440_v23 = vpop.f32.mrf.mxu1 }
  0xd5   :  { %v384_v24 = vpop.f32.mrf.mxu2 }
  0xd6   :  { %v1101_v25 = vadd.f32 %v473_v10, %v384_v24  ;;  %v346_v26 = vpop.f32.mrf.mxu0 }
  0xd7   :  { %v1103_v27 = vadd.f32 %v435_v9, %v346_v26 }
  0xd8   :  { %v504_v29 = vmax.f32 %v1085_v63, %v1101_v25 }
  0xd9   :  { %v501_v30 = vmax.f32 %v1087_v1, %v1103_v27 }
  0xda   :  { %v1113_v46 = vpop.f32.mrf.mxu3 }
  0xdb   :  { %v443_v31 = vpop.f32.mrf.mxu1 }
  0xdd   :  { %v386_v32 = vpop.f32.mrf.mxu2 }
  0xde   :  { %v1109_v33 = vadd.f32 %v475_v18, %v386_v32  ;;  %v349_v34 = vpop.f32.mrf.mxu0 }
  0xdf   :  { %v439_v54 = vadd.f32 %v438_v16, %v349_v34 }
  0xe0   :  { %v505_v35 = vmax.f32 %v1089_v5, %v1109_v33 }
  0xe2   :  { %v488_v51 = vpop.f32.mrf.mxu3 }
  0xe3   :  { %v445_v37 = vpop.f32.mrf.mxu1 }
  0xe5   :  { %v389_v38 = vpop.f32.mrf.mxu2 }
  0xe6   :  { %v351_v39 = vpop.f32.mrf.mxu0  ;;  %v479_v16 = vadd.f32 %v478_v28, %v389_v38 }
  0xe7   :  { %v441_v61 = vadd.f32 %v440_v23, %v351_v39 }
  0xea   :  { %v490_v3 = vpop.f32.mrf.mxu3 }
  0xeb   :  { %v448_v40 = vpop.f32.mrf.mxu1 }
  0xed   :  { %v391_v42 = vpop.f32.mrf.mxu2 }
  0xee   :  { %v354_v43 = vpop.f32.mrf.mxu0 }
  0xef   :  { %v444_v24 = vadd.f32 %v443_v31, %v354_v43 }
  0xf3   :  { %v450_v44 = vpop.f32.mrf.mxu1 }
  0xf5   :  { %v394_v45 = vpop.f32.mrf.mxu2 }
  0xf6   :  { %v356_v47 = vpop.f32.mrf.mxu0 }
  0xfb   :  { %v453_v48 = vpop.f32.mrf.mxu1 }
  0xfd   :  { %v396_v49 = vpop.f32.mrf.mxu2 }
  0xfe   :  { %v359_v50 = vpop.f32.mrf.mxu0  ;;  %v486_v59 = vadd.f32 %v1113_v46, %v396_v49 }
  0xff   :  { %v449_v53 = vadd.f32 %v448_v40, %v359_v50  ;;  %v481_v40 = vadd.f32 %v480_v36, %v391_v42 }
 0x101   :  { %v506_v56 = vmax.f32 %v439_v54, %v449_v53  ;;  %v484_v54 = vadd.f32 %v483_v41, %v394_v45 }
 0x103   :  { %v455_v55 = vpop.f32.mrf.mxu1  ;;  %v514_v62 = vmax.f32 %v498_v8, %v506_v56 }
 0x105   :  { %v399_v58 = vpop.f32.mrf.mxu2  ;;  %v526_v7 = vadd.f32 %v816_v0, %v514_v62 }
 0x106   :  { %v361_v60 = vpop.f32.mrf.mxu0  ;;  %v489_v11 = vadd.f32 %v488_v51, %v399_v58 }
 0x107   :  { %v451_v2 = vadd.f32 %v450_v44, %v361_v60  ;;  %v534_v18 = vmax.f32 %v526_v7, 0.0 }
 0x108   :  { %v510_v26 = vmax.f32 %v479_v16, %v489_v11 }
 0x109   :  { %v507_v4 = vmax.f32 %v441_v61, %v451_v2 }
 0x10b   :  { %v458_v6 = vpop.f32.mrf.mxu1  ;;  %v515_v9 = vmax.f32 %v499_v15, %v507_v4  ;;  %v493_v15 = vpop.f32.mrf.mxu3 }
 0x10c   :  { %v459_v10 = vadd.f32 %v458_v6, %v1077_v52 }
 0x10d   :  { %v527_v13 = vadd.f32 %v816_v0, %v515_v9  ;;  %v401_v14 = vpop.f32.mrf.mxu2 }
 0x10e   :  { %v364_v17 = vpop.f32.mrf.mxu0  ;;  %v502_v8 = vmax.f32 %v459_v10, %v1092_v12  ;;  %v491_v34 = vadd.f32 %v490_v3, %v401_v14 }
 0x10f   :  { %v535_v20 = vmax.f32 %v527_v13, 0.0  ;;  %v454_v23 = vadd.f32 %v453_v48, %v364_v17  ;;  %v446_v48 = vadd.f32 %v445_v37, %v356_v47 }
 0x110   :  { %v518_v52 = vmax.f32 %v502_v8, %v510_v26  ;;  %v511_v38 = vmax.f32 %v481_v40, %v491_v34 }
 0x111   :  { %v786_v32 = vpack.c.bf16 %v535_v20, %v534_v18  ;;  %v508_v44 = vmax.f32 %v444_v24, %v454_v23 }
 0x112   :  { %v530_v51 = vadd.f32 %v816_v0, %v518_v52 }
 0x113   :  { %v460_v39 = vpop.f32.mrf.mxu1  ;;  %787 = vst [vmem:[%s1150_s3] sm:$0xff] %v786_v32   ;;  %v516_v36 = vmax.f32 %v500_v22, %v508_v44  ;;  %v495_v47 = vpop.f32.mrf.mxu3 }
 0x114   :  { %v461_v28 = vadd.f32 %v460_v39, %v1081_v57  ;;  %v538_v61 = vmax.f32 %v530_v51, 0.0 }
 0x115   :  { %v404_v12 = vpop.f32.mrf.mxu2  ;;  %v528_v57 = vadd.f32 %v816_v0, %v516_v36 }
 0x116   :  { %v503_v50 = vmax.f32 %v461_v28, %v1095_v19  ;;  %v494_v31 = vadd.f32 %v493_v15, %v404_v12  ;;  %v366_v43 = vpop.f32.mrf.mxu0 }
 0x117   :  { %v456_v53 = vadd.f32 %v455_v55, %v366_v43  ;;  %v536_v41 = vmax.f32 %v528_v57, 0.0 }
 0x118   :  { %v519_v42 = vmax.f32 %v503_v50, %v511_v38  ;;  %v512_v60 = vmax.f32 %v484_v54, %v494_v31 }
 0x119   :  { %v509_v58 = vmax.f32 %v446_v48, %v456_v53 }
 0x11a   :  { %v531_v56 = vadd.f32 %v816_v0, %v519_v42  ;;  %v520_v21 = vmax.f32 %v504_v29, %v512_v60 }
 0x11b   :  { %v517_v19 = vmax.f32 %v501_v30, %v509_v58 }
 0x11c   :  { %v539_v62 = vmax.f32 %v531_v56, 0.0  ;;  %v532_v27 = vadd.f32 %v816_v0, %v520_v21 }
 0x11d   :  { %v529_v2 = vadd.f32 %v816_v0, %v517_v19  ;;  %v406_v3 = vpop.f32.mrf.mxu2 }
 0x11e   :  { %v796_v37 = vpack.c.bf16 %v539_v62, %v538_v61  ;;  %v496_v22 = vadd.f32 %v495_v47, %v406_v3  ;;  %v540_v25 = vmax.f32 %v532_v27, 0.0 }
 0x11f   :  { %v537_v45 = vmax.f32 %v529_v2, 0.0 }
 0x120   :  { %804 = vst [vmem:[%s1150_s3 + $0x10] sm:$0xff] %v796_v37   ;;  %v513_v55 = vmax.f32 %v486_v59, %v496_v22 }
 0x121   :  { %v791_v1 = vpack.c.bf16 %v537_v45, %v536_v41 }
 0x122   :  { %v521_v30 = vmax.f32 %v505_v35, %v513_v55 }
 0x123   :  { %803 = vst [vmem:[%s1150_s3 + $0x8] sm:$0xff] %v791_v1  }
 0x124   :  { %v533_v63 = vadd.f32 %v816_v0, %v521_v30 }
 0x126   :  { %v541_v29 = vmax.f32 %v533_v63, 0.0 }
 0x128   :  { %v801_v46 = vpack.c.bf16 %v541_v29, %v540_v25 }
 0x12a   :  { %805 = vst [vmem:[%s1150_s3 + $0x18] sm:$0xff] %v801_v46  }

// kernel: net_forward.5
= control target key start
LH: loop header
LB: loop body
LE: loop exit
PB: predicated region body
PF: predicated region fallthrough
CT: control target
= control target key end

     0   :  { %vm246_vm0 = vcmask 130048   ;;  %s863_s1 = inlined_call_operand.vmem [shape: bf16[400,128], index: 1, kind: input, shape index: {}]   ;;  %s864_s0 = inlined_call_operand.vmem [shape: bf16[8,400], index: 0, kind: input, shape index: {}]   ;;  %s865_s3 = inlined_call_operand.vmem [shape: bf16[128,128], index: 3, kind: input, shape index: {}]   ;;  %s866_s2 = inlined_call_operand.vmem [shape: f32[1,128], index: 2, kind: input, shape index: {}]   ;;  %s867_s4 = inlined_call_operand.vmem [shape: f32[1,128], index: 4, kind: input, shape index: {}]   ;;  %s868_s5 = inlined_call_operand.vmem [shape: bf16[128,128], index: 5, kind: input, shape index: {}]   ;;  %s869_s6 = inlined_call_operand.vmem [shape: f32[1,128], index: 6, kind: input, shape index: {}]   ;;  %s870_s7 = inlined_call_operand.vmem [shape: f32[8,128], index: 7, kind: output, shape index: {}]  }
   0x1   :  { %v645_v0 = vld [vmem:[%s863_s1 + $0x38] sm:$0xff]  ;;  %v644_v3 = vld [vmem:[%s863_s1 + $0x30] sm:$0xff]  ;;  %v643_v6 = vld [vmem:[%s863_s1 + $0x28] sm:$0xff] }
   0x2   :  { %v653_v1 = vld [vmem:[%s863_s1 + $0x78] sm:$0xff]  ;;  %250 = vmatpush.bf16.msra.mxu0 %v645_v0  ;;  %v652_v4 = vld [vmem:[%s863_s1 + $0x70] sm:$0xff]  ;;  %v651_v7 = vld [vmem:[%s863_s1 + $0x68] sm:$0xff] }
   0x3   :  { %v661_v2 = vld [vmem:[%s863_s1 + $0xb8] sm:$0xff]  ;;  %263 = vmatpush.bf16.msra.mxu1 %v653_v1  ;;  %v660_v5 = vld [vmem:[%s863_s1 + $0xb0] sm:$0xff]  ;;  %v662_v8 = vld [vmem:[%s863_s1 + $0xc0] sm:$0xff] }
   0x4   :  { %276 = vmatpush.bf16.msra.mxu2 %v661_v2  ;;  %v659_v9 = vld [vmem:[%s863_s1 + $0xa8] sm:$0xff]  ;;  %296 = vmatpush.bf16.msra.mxu3 %v662_v8  ;;  %v670_v12 = vld [vmem:[%s865_s3 + $0x38] sm:$0xff]  ;;  %v642_v13 = vld [vmem:[%s863_s1 + $0x20] sm:$0xff] }
   0x5   :  { %v28_v10 = vld [vmem:[%s864_s0 + $0x8] sm:$0xff]  ;;  %v650_v14 = vld [vmem:[%s863_s1 + $0x60] sm:$0xff]  ;;  %v669_v17 = vld [vmem:[%s865_s3 + $0x30] sm:$0xff] }
   0x6   :  { %251 = vmatpush.bf16.msra.mxu0 %v644_v3  ;;  %v88_v11 = vunpack.c.h.b16 %v28_v10  ;;  %v658_v16 = vld [vmem:[%s863_s1 + $0xa0] sm:$0xff]  ;;  %v641_v18 = vld [vmem:[%s863_s1 + $0x18] sm:$0xff]  ;;  %v668_v21 = vld [vmem:[%s865_s3 + $0x28] sm:$0xff]  ;;  %v87_v34 = vunpack.c.l.b16 %v28_v10 }
   0x7   :  { %264 = vmatpush.bf16.msra.mxu1 %v652_v4  ;;  %v649_v19 = vld [vmem:[%s863_s1 + $0x58] sm:$0xff]  ;;  %v640_v22 = vld [vmem:[%s863_s1 + $0x10] sm:$0xff]  ;;  %v667_v25 = vld [vmem:[%s865_s3 + $0x20] sm:$0xff] }
   0x8   :  { %277 = vmatpush.bf16.msra.mxu2 %v660_v5  ;;  %v92_v15 = vpack.c.b16 %v88_v11, %v88_v11  ;;  %372 = vmatpush.bf16.msrb.mxu3 %v670_v12  ;;  %v657_v20 = vld [vmem:[%s863_s1 + $0x98] sm:$0xff]  ;;  %v648_v23 = vld [vmem:[%s863_s1 + $0x50] sm:$0xff]  ;;  %v639_v26 = vld [vmem:[%s863_s1 + $0x8] sm:$0xff]  ;;  %v91_v38 = vpack.c.b16 %v87_v34, %v87_v34 }
   0x9   :  { %v656_v24 = vld [vmem:[%s863_s1 + $0x90] sm:$0xff]  ;;  %v647_v27 = vld [vmem:[%s863_s1 + $0x48] sm:$0xff]  ;;  %v27_v28 = vld [vmem:[%s864_s0] sm:$0xff] }
   0xa   :  { %252 = vmatpush.bf16.msra.mxu0 %v643_v6  ;;  %573 = vmatmul.msk.bf16.vlgmr.msra.gmra.mxu3 %vm246_vm0, %v92_v15  ;;  %v655_v29 = vld [vmem:[%s863_s1 + $0x88] sm:$0xff]  ;;  %v85_v30 = vunpack.c.l.b16 %v27_v28  ;;  %v86_v31 = vunpack.c.h.b16 %v27_v28  ;;  %v638_v32 = vld [vmem:[%s863_s1] sm:$0xff]  ;;  %v666_v39 = vld [vmem:[%s865_s3 + $0x18] sm:$0xff] }
   0xb   :  { %265 = vmatpush.bf16.msra.mxu1 %v651_v7  ;;  %v646_v33 = vld [vmem:[%s863_s1 + $0x40] sm:$0xff]  ;;  %v665_v40 = vld [vmem:[%s865_s3 + $0x10] sm:$0xff]  ;;  %v664_v41 = vld [vmem:[%s865_s3 + $0x8] sm:$0xff] }
   0xc   :  { %278 = vmatpush.bf16.msra.mxu2 %v659_v9  ;;  %373 = vmatpush.bf16.msrb.mxu3 %v669_v17  ;;  %v654_v35 = vld [vmem:[%s863_s1 + $0x80] sm:$0xff]  ;;  %v89_v36 = vpack.c.b16 %v85_v30, %v85_v30  ;;  %v90_v37 = vpack.c.b16 %v86_v31, %v86_v31  ;;  %v678_v43 = vld [vmem:[%s868_s5 + $0x38] sm:$0xff]  ;;  %v677_v45 = vld [vmem:[%s868_s5 + $0x30] sm:$0xff] }
   0xd   :  { %v663_v42 = vld [vmem:[%s865_s3] sm:$0xff]  ;;  %v676_v46 = vld [vmem:[%s868_s5 + $0x28] sm:$0xff]  ;;  %v674_v50 = vld [vmem:[%s868_s5 + $0x18] sm:$0xff] }
   0xe   :  { %253 = vmatpush.bf16.msra.mxu0 %v642_v13  ;;  %v675_v48 = vld [vmem:[%s868_s5 + $0x20] sm:$0xff]  ;;  %v673_v54 = vld [vmem:[%s868_s5 + $0x10] sm:$0xff]  ;;  %v672_v0 = vld [vmem:[%s868_s5 + $0x8] sm:$0xff] }
   0xf   :  { %266 = vmatpush.bf16.msra.mxu1 %v650_v14  ;;  %v679_v49 = vld [vmem:[%s866_s2] ss:$0 sm:$0xff] }
  0x10   :  { %279 = vmatpush.bf16.msra.mxu2 %v658_v16  ;;  %374 = vmatpush.bf16.msrb.mxu3 %v668_v21  ;;  %v671_v1 = vld [vmem:[%s868_s5] sm:$0xff] }
  0x11   :  { %v680_v2 = vld [vmem:[%s867_s4] ss:$0 sm:$0xff] }
  0x12   :  { %254 = vmatpush.bf16.msra.mxu0 %v641_v18  ;;  %v681_v8 = vld [vmem:[%s869_s6] ss:$0 sm:$0xff] }
  0x13   :  { %267 = vmatpush.bf16.msra.mxu1 %v649_v19 }
  0x14   :  { %280 = vmatpush.bf16.msra.mxu2 %v657_v20  ;;  %375 = vmatpush.bf16.msrb.mxu3 %v667_v25 }
  0x16   :  { %255 = vmatpush.bf16.msra.mxu0 %v640_v22 }
  0x17   :  { %268 = vmatpush.bf16.msra.mxu1 %v648_v23 }
  0x18   :  { %281 = vmatpush.bf16.msra.mxu2 %v656_v24  ;;  %376 = vmatpush.bf16.msrb.mxu3 %v666_v39 }
  0x1a   :  { %256 = vmatpush.bf16.msra.mxu0 %v639_v26 }
  0x1b   :  { %269 = vmatpush.bf16.msra.mxu1 %v647_v27 }
  0x1c   :  { %282 = vmatpush.bf16.msra.mxu2 %v655_v29  ;;  %377 = vmatpush.bf16.msrb.mxu3 %v665_v40 }
  0x1e   :  { %257 = vmatpush.bf16.msra.mxu0 %v638_v32 }
  0x1f   :  { %270 = vmatpush.bf16.msra.mxu1 %v646_v33 }
  0x20   :  { %283 = vmatpush.bf16.msra.mxu2 %v654_v35  ;;  %378 = vmatpush.bf16.msrb.mxu3 %v664_v41 }
  0x21   :  { %258 = vmatmul.bf16.vlgmr.msra.gmra.mxu0 %v89_v36 }
  0x22   :  { %271 = vmatmul.bf16.vlgmr.msra.gmra.mxu1 %v90_v37  ;;  %455 = vmatpush.bf16.msrb.mxu0 %v678_v43 }
  0x23   :  { %284 = vmatmul.bf16.vlgmr.msra.gmra.mxu2 %v91_v38 }
  0x24   :  { %379 = vmatpush.bf16.msrb.mxu3 %v663_v42 }
  0x26   :  { %456 = vmatpush.bf16.msrb.mxu0 %v677_v45 }
  0x2a   :  { %457 = vmatpush.bf16.msrb.mxu0 %v676_v46 }
  0x2e   :  { %458 = vmatpush.bf16.msrb.mxu0 %v675_v48 }
  0x32   :  { %459 = vmatpush.bf16.msrb.mxu0 %v674_v50 }
  0x36   :  { %460 = vmatpush.bf16.msrb.mxu0 %v673_v54 }
  0x3a   :  { %461 = vmatpush.bf16.msrb.mxu0 %v672_v0 }
  0x3e   :  { %462 = vmatpush.bf16.msrb.mxu0 %v671_v1 }
  0x8d   :  { %v298_v44 = vpop.f32.mrf.mxu3 }
  0x95   :  { %v300_v47 = vpop.f32.mrf.mxu3 }
  0x9e   :  { %v259_v51 = vpop.f32.mrf.mxu0 }
  0x9f   :  { %v272_v52 = vpop.f32.mrf.mxu1  ;;  %v260_v53 = vadd.f32 %v679_v49, %v259_v51 }
  0xa1   :  { %v273_v55 = vadd.f32 %v272_v52, %v260_v53 }
  0xa6   :  { %v285_v56 = vpop.f32.mrf.mxu2  ;;  %v261_v58 = vpop.f32.mrf.mxu0 }
  0xa7   :  { %v286_v57 = vadd.f32 %v285_v56, %v273_v55  ;;  %v274_v59 = vpop.f32.mrf.mxu1 }
  0xa9   :  { %v299_v60 = vadd.f32 %v298_v44, %v286_v57 }
  0xab   :  { %v302_v61 = vmax.f32 %v299_v60, 0.0 }
  0xad   :  { %v303_v62 = vpack.c.bf16 %v302_v61, %v302_v61 }
  0xae   :  { %v287_v63 = vpop.f32.mrf.mxu2 }
  0xaf   :  { %380 = vmatmul.bf16.vlgmr.msrb.gmra.mxu3 %v303_v62 }
 0x132   :  { %v381_v3 = vpop.f32.mrf.mxu3 }
 0x133   :  { %v382_v4 = vadd.f32 %v680_v2, %v381_v3 }
 0x135   :  { %v385_v5 = vmax.f32 %v382_v4, 0.0 }
 0x137   :  { %v386_v6 = vpack.c.bf16 %v385_v5, %v385_v5 }
 0x139   :  { %463 = vmatmul.bf16.vlgmr.msrb.gmra.mxu0 %v386_v6 }
 0x13a   :  { %v383_v7 = vpop.f32.mrf.mxu3 }
 0x1b6   :  { %v464_v9 = vpop.f32.mrf.mxu0 }
 0x1b7   :  { %v465_v10 = vadd.f32 %v681_v8, %v464_v9 }
 0x1b9   :  { %468 = vst [vmem:[%s870_s7] sm:$0xff] %v465_v10 }
 0x1be   :  { %v466_v11 = vpop.f32.mrf.mxu0 }

</bundles_post_ra>
